<compile_context>
chip_gen: v7x
topology: tpu7x:2x2x1
jax: 0.10.0
libtpu: 0.0.40
codegen_flags: <defaults>
</compile_context>

<pallas_src>
import functools
import math

import jax
import jax.numpy as jnp
from jax import lax
from jax.experimental import pallas as pl
from jax.experimental.pallas import tpu as pltpu


# ----------------------------- Pallas kernels -----------------------------

def _gemm_kernel(x_ref, w_ref, b_ref, o_ref, *, relu):
    """Whole-problem GEMM: o = act(x @ w + b). x f32, w bf16, accumulate f32."""
    acc = jnp.dot(x_ref[...].astype(jnp.bfloat16), w_ref[...],
                  preferred_element_type=jnp.float32) + b_ref[...]
    if relu:
        acc = jnp.maximum(acc, 0.0)
    o_ref[...] = acc


def _softmax_last(x):
    x = x - jnp.max(x, axis=-1, keepdims=True)
    e = jnp.exp(x)
    return e * pl.reciprocal(jnp.sum(e, axis=-1, keepdims=True), approx=True)


def _da_kernel(cols_ref, colsT_ref, wpc_ref, bpc_ref, wcc_ref, bcc_ref,
               wccT_ref, bccT_ref, wqkv_ref, bqkv_ref, wo_ref, bo_ref,
               wco_ref, bco_ref, o_ref, *, C, scale_p, scale_c):
    """Fused DAModule for one batch element, all in token-major layout.

    cols:  (Nt, 9C)  im2col columns of the 3x3/pad1 branch convs (shared).
    colsT: (9C, Nt)  same columns transposed (lets the channel branch get a
                     channel-major conv result with plain NN matmuls).
    Output: (Nt, C) = position-attention tokens + channel-attention tokens.
    """
    cols = cols_ref[...].astype(jnp.bfloat16)            # (Nt, 9C)
    colsT = colsT_ref[...].astype(jnp.bfloat16)          # (9C, Nt)

    # the two 3x3 'cnn' convs of PAM / CAM as GEMMs
    yp = jnp.dot(cols, wpc_ref[...], preferred_element_type=jnp.float32) + bpc_ref[...]   # (Nt, C)
    yc = jnp.dot(cols, wcc_ref[...], preferred_element_type=jnp.float32) + bcc_ref[...]   # (Nt, C)
    ych = jnp.dot(wccT_ref[...], colsT, preferred_element_type=jnp.float32) + bccT_ref[...]  # (C, Nt)

    # ----------------- position attention (tokens = spatial) ---------------
    qkv = jnp.dot(yp.astype(jnp.bfloat16), wqkv_ref[...],
                  preferred_element_type=jnp.float32) + bqkv_ref[...]                      # (Nt, 3C)
    q = qkv[:, :C]
    k = qkv[:, C:2 * C]
    v = qkv[:, 2 * C:]
    att = lax.dot_general(q, k, (((1,), (1,)), ((), ())),
                          preferred_element_type=jnp.float32) * scale_p                    # (Nt, Nt)
    att = _softmax_last(att)
    # TODO(synk): attention dropout(p=0.1) treated as eval-mode identity.
    p_tok = jnp.dot(att, v, preferred_element_type=jnp.float32)                            # (Nt, C)
    p_tok = jnp.dot(p_tok.astype(jnp.bfloat16), wo_ref[...],
                    preferred_element_type=jnp.float32) + bo_ref[...]                      # (Nt, C)

    # ----------------- channel attention (tokens = channels) ---------------
    gram = lax.dot_general(ych, ych, (((1,), (1,)), ((), ())),
                           preferred_element_type=jnp.float32) * scale_c                   # (C, C)
    catt = _softmax_last(gram)
    # out_c^T computed directly in token layout: (att_c @ y_c)^T = y_tok @ att_c^T
    c_pre = lax.dot_general(yc, catt, (((1,), (1,)), ((), ())),
                            preferred_element_type=jnp.float32)                            # (Nt, C)
    # fc_o over the H*W dim, still in token layout: W @ out_c^T + b[:, None]
    c_tok = jnp.dot(wco_ref[...], c_pre, preferred_element_type=jnp.float32) + bco_ref[...]  # (Nt, C)

    o_ref[...] = p_tok + c_tok


def _fc_tail_kernel(x_ref, w1_ref, b1_ref, w2_ref, b2_ref, w3_ref, b3_ref, o_ref):
    """Fused fc1 -> ReLU -> fc2 -> ReLU -> out -> LogSoftmax(dim=1).

    One grid step per batch element; x_ref holds the S sequence rows of that
    element, so LogSoftmax over dim=1 is a reduction over axis 0 here.
    """
    x = x_ref[...].astype(jnp.bfloat16)                                              # (S, F)
    h = jnp.dot(x, w1_ref[...], preferred_element_type=jnp.float32) + b1_ref[...]
    h = jnp.maximum(h, 0.0)
    h = jnp.dot(h.astype(jnp.bfloat16), w2_ref[...],
                preferred_element_type=jnp.float32) + b2_ref[...]
    h = jnp.maximum(h, 0.0)
    logits = jnp.dot(h.astype(jnp.bfloat16), w3_ref[...],
                     preferred_element_type=jnp.float32) + b3_ref[...]               # (S, O)
    m = jnp.max(logits, axis=0, keepdims=True)
    e = jnp.exp(logits - m)
    o_ref[...] = logits - m - jnp.log(jnp.sum(e, axis=0, keepdims=True))


# ----------------------------- Pallas wrappers -----------------------------

def gemm_bias_act(x, w, b, relu=False):
    """y = act(x @ w + b); single-step whole-problem block (no padding copies)."""
    M, K = x.shape
    N = w.shape[1]
    return pl.pallas_call(
        functools.partial(_gemm_kernel, relu=relu),
        out_shape=jax.ShapeDtypeStruct((M, N), jnp.float32),
        grid=(1,),
        in_specs=[pl.BlockSpec((M, K), lambda i: (0, 0)),
                  pl.BlockSpec((K, N), lambda i: (0, 0)),
                  pl.BlockSpec((1, N), lambda i: (0, 0))],
        out_specs=pl.BlockSpec((M, N), lambda i: (0, 0)),
    )(x, w, b)


def da_module_pallas(x, q):
    """Fused dual-attention. x: (B, H, W, C) NHWC conv3 output -> (B, H*W, C)."""
    B, H, W, C = x.shape
    Nt = H * W
    K9 = 9 * C
    cols, _, _ = im2col_s2d(x, 3, 1, padding=1)           # (B*Nt, 9C), shared by both branches
    cols = cols.reshape(B, Nt, K9)
    colsT = cols.transpose(0, 2, 1)                       # (B, 9C, Nt) (tiny)
    scale_p = 1.0 / math.sqrt(C)    # ScaledDotProductAttention: d_k = d_model = C
    scale_c = 1.0 / math.sqrt(Nt)   # SimplifiedSDPA: d_k = H*W

    def w_spec(r, c):
        return pl.BlockSpec((r, c), lambda b: (0, 0))

    return pl.pallas_call(
        functools.partial(_da_kernel, C=C, scale_p=scale_p, scale_c=scale_c),
        out_shape=jax.ShapeDtypeStruct((B, Nt, C), jnp.float32),
        grid_spec=pltpu.PrefetchScalarGridSpec(
            num_scalar_prefetch=0,
            grid=(B,),
            in_specs=[
                pl.BlockSpec((pl.Squeezed(), Nt, K9), lambda b: (b, 0, 0)),
                pl.BlockSpec((pl.Squeezed(), K9, Nt), lambda b: (b, 0, 0)),
                w_spec(K9, C), w_spec(1, C),          # PAM branch conv
                w_spec(K9, C), w_spec(1, C),          # CAM branch conv (token form)
                w_spec(C, K9), w_spec(C, 1),          # CAM branch conv (channel form)
                w_spec(C, 3 * C), w_spec(1, 3 * C),   # fused fc_q|fc_k|fc_v
                w_spec(C, C), w_spec(1, C),           # PAM fc_o
                w_spec(Nt, Nt), w_spec(Nt, 1),        # CAM fc_o
            ],
            out_specs=pl.BlockSpec((pl.Squeezed(), Nt, C), lambda b: (b, 0, 0)),
        ),
        compiler_params=pltpu.CompilerParams(dimension_semantics=("parallel",)),
    )(cols, colsT,
      q['wpc'], q['bpc'], q['wcc'], q['bcc'], q['wccT'], q['bccT'],
      q['wqkv'], q['bqkv'], q['wo'], q['bo'], q['wco'], q['bco'])


def fc_tail_pallas(feat, q, batch_size, sequence_length):
    """Fused fc + out + LogSoftmax(dim=1). feat: (B*S, F) -> (B, S, O)."""
    F = feat.shape[-1]
    H1 = q['fw1'].shape[1]
    H2 = q['fw2'].shape[1]
    O = q['fw3'].shape[1]
    feat3 = feat.reshape(batch_size, sequence_length, F)

    def w_spec(r, c):
        return pl.BlockSpec((r, c), lambda b: (0, 0))

    return pl.pallas_call(
        _fc_tail_kernel,
        out_shape=jax.ShapeDtypeStruct((batch_size, sequence_length, O), jnp.float32),
        grid_spec=pltpu.PrefetchScalarGridSpec(
            num_scalar_prefetch=0,
            grid=(batch_size,),
            in_specs=[
                pl.BlockSpec((pl.Squeezed(), sequence_length, F), lambda b: (b, 0, 0)),
                w_spec(F, H1), w_spec(1, H1),
                w_spec(H1, H2), w_spec(1, H2),
                w_spec(H2, O), w_spec(1, O),
            ],
            out_specs=pl.BlockSpec((pl.Squeezed(), sequence_length, O),
                                   lambda b: (b, 0, 0)),
        ),
        compiler_params=pltpu.CompilerParams(dimension_semantics=("parallel",)),
    )(feat3, q['fw1'], q['fb1'], q['fw2'], q['fb2'], q['fw3'], q['fb3'])


# ------------------------------- JAX glue ----------------------------------

def im2col_s2d(x, k, stride, padding=0):
    """NHWC im2col via space-to-depth (requires k % stride == 0).

    x: (B, H, W, C) -> cols (B*Ho*Wo, k*k*C) with column order
    (block_i, block_j, sub_i, sub_j, c); conv_w_s2d produces the matching
    weight layout.  For the 8x8/stride-4 conv this needs only 4 slices.
    """
    B, H, W, C = x.shape
    if padding:
        x = jnp.pad(x, ((0, 0), (padding, padding), (padding, padding), (0, 0)))
        H += 2 * padding
        W += 2 * padding
    s = stride
    assert k % s == 0
    kb = k // s
    Ho = (H - k) // s + 1
    Wo = (W - k) // s + 1
    Hb = Ho + kb - 1
    Wb = Wo + kb - 1
    x = x[:, :Hb * s, :Wb * s, :]
    xb = x.reshape(B, Hb, s, Wb, s, C).transpose(0, 1, 3, 2, 4, 5)
    xb = xb.reshape(B, Hb, Wb, s * s * C)
    patches = [xb[:, i:i + Ho, j:j + Wo, :] for i in range(kb) for j in range(kb)]
    cols = jnp.stack(patches, axis=3).reshape(B * Ho * Wo, kb * kb * s * s * C)
    return cols, Ho, Wo


def conv_w_s2d(w, stride):
    """PyTorch conv weight (Cout, Cin, k, k) -> GEMM matrix matching im2col_s2d."""
    Cout, Cin, k, _ = w.shape
    s = stride
    kb = k // s
    wm = w.reshape(Cout, Cin, kb, s, kb, s).transpose(2, 4, 3, 5, 1, 0)
    return wm.reshape(kb * kb * s * s * Cin, Cout)


def prepare_params(p):
    """One-time conversion of PyTorch-layout params into kernel-ready layout."""
    f32, bf16 = jnp.float32, jnp.bfloat16
    q = {}
    q['w1'] = conv_w_s2d(p['conv1_w'], 4).astype(bf16)
    q['b1'] = p['conv1_b'].reshape(1, -1).astype(f32)
    q['w2'] = conv_w_s2d(p['conv2_w'], 2).astype(bf16)
    q['b2'] = p['conv2_b'].reshape(1, -1).astype(f32)
    q['w3'] = conv_w_s2d(p['conv3_w'], 1).astype(bf16)
    q['b3'] = p['conv3_b'].reshape(1, -1).astype(f32)

    q['wpc'] = conv_w_s2d(p['pam_conv_w'], 1).astype(bf16)       # (9C, C)
    q['bpc'] = p['pam_conv_b'].reshape(1, -1).astype(f32)
    wcc = conv_w_s2d(p['cam_conv_w'], 1)                          # (9C, C)
    q['wcc'] = wcc.astype(bf16)
    q['bcc'] = p['cam_conv_b'].reshape(1, -1).astype(f32)
    q['wccT'] = wcc.T.astype(bf16)                                # (C, 9C)
    q['bccT'] = p['cam_conv_b'].reshape(-1, 1).astype(f32)

    C = p['pam_wq'].shape[0]
    q['wqkv'] = jnp.concatenate(
        [p['pam_wq'].T, p['pam_wk'].T, p['pam_wv'].T], axis=1).astype(bf16)  # (C, 3C)
    q['bqkv'] = jnp.concatenate(
        [p['pam_bq'], p['pam_bk'], p['pam_bv']]).reshape(1, 3 * C).astype(f32)
    q['wo'] = p['pam_wo'].T.astype(bf16)                          # (C, C)
    q['bo'] = p['pam_bo'].reshape(1, -1).astype(f32)
    q['wco'] = p['cam_wo'].astype(f32)                            # (Nt, Nt), applied as W @ tokens
    q['bco'] = p['cam_bo'].reshape(-1, 1).astype(f32)

    Nt = p['cam_wo'].shape[0]
    H1 = p['fc1_w'].shape[0]
    # DA output is kept token-major (hw, c); permute fc1 columns from PyTorch's
    # NCHW flatten order (c, hw) so semantics are unchanged.
    fc1 = p['fc1_w'].reshape(H1, C, Nt).transpose(0, 2, 1).reshape(H1, Nt * C)
    q['fw1'] = fc1.T.astype(bf16)
    q['fb1'] = p['fc1_b'].reshape(1, -1).astype(f32)
    q['fw2'] = p['fc2_w'].T.astype(bf16)
    q['fb2'] = p['fc2_b'].reshape(1, -1).astype(f32)
    q['fw3'] = p['out_w'].T.astype(bf16)
    q['fb3'] = p['out_b'].reshape(1, -1).astype(f32)
    return q


def ddaqn_forward(q, x, batch_size, sequence_length, num_feature, num_grid):
    x = x.reshape(-1, num_feature, num_grid, num_grid)
    x = x.transpose(0, 2, 3, 1)                     # single NCHW -> NHWC transpose
    B2 = x.shape[0]

    cols, Ho, Wo = im2col_s2d(x, 8, 4)
    h = gemm_bias_act(cols, q['w1'], q['b1'], relu=True).reshape(B2, Ho, Wo, -1)
    cols, Ho, Wo = im2col_s2d(h, 4, 2)
    h = gemm_bias_act(cols, q['w2'], q['b2'], relu=True).reshape(B2, Ho, Wo, -1)
    cols, Ho, Wo = im2col_s2d(h, 3, 1)
    h = gemm_bias_act(cols, q['w3'], q['b3'], relu=True).reshape(B2, Ho, Wo, -1)

    da = da_module_pallas(h, q)                     # (B2, H*W, C) token-major
    feat = da.reshape(B2, -1)                       # (B2, H*W*C)

    out = fc_tail_pallas(feat, q, batch_size, sequence_length)  # (B, S, O), LogSoftmax(dim=1)
    return out, None


# --------------------------- parameter init --------------------------------

def init_params(key, num_feature, num_outputs, at_size, num_out_conv, fc_size=128):
    ks = iter(jax.random.split(key, 32))

    def conv_w(shape):
        fan_in = shape[1] * shape[2] * shape[3]
        bound = 1.0 / math.sqrt(fan_in)
        return jax.random.uniform(next(ks), shape, jnp.float32, -bound, bound)

    def bias(n, fan_in):
        bound = 1.0 / math.sqrt(fan_in)
        return jax.random.uniform(next(ks), (n,), jnp.float32, -bound, bound)

    def xavier(fan_out, fan_in):
        limit = math.sqrt(6.0 / (fan_in + fan_out))
        return jax.random.uniform(next(ks), (fan_out, fan_in), jnp.float32, -limit, limit)

    hw = num_out_conv * num_out_conv
    p = {}
    p['conv1_w'] = conv_w((32, num_feature, 8, 8)); p['conv1_b'] = bias(32, num_feature * 64)
    p['conv2_w'] = conv_w((64, 32, 4, 4));          p['conv2_b'] = bias(64, 32 * 16)
    p['conv3_w'] = conv_w((at_size, 64, 3, 3));     p['conv3_b'] = bias(at_size, 64 * 9)
    p['pam_conv_w'] = conv_w((at_size, at_size, 3, 3)); p['pam_conv_b'] = bias(at_size, at_size * 9)
    p['cam_conv_w'] = conv_w((at_size, at_size, 3, 3)); p['cam_conv_b'] = bias(at_size, at_size * 9)
    for name in ('pam_wq', 'pam_wk', 'pam_wv', 'pam_wo'):
        p[name] = xavier(at_size, at_size)
    for name in ('pam_bq', 'pam_bk', 'pam_bv', 'pam_bo'):
        p[name] = bias(at_size, at_size)
    p['cam_wo'] = xavier(hw, hw); p['cam_bo'] = bias(hw, hw)
    p['fc1_w'] = xavier(512, at_size * hw); p['fc1_b'] = bias(512, at_size * hw)
    p['fc2_w'] = xavier(fc_size, 512);      p['fc2_b'] = bias(fc_size, 512)
    p['out_w'] = xavier(num_outputs, fc_size); p['out_b'] = bias(num_outputs, fc_size)
    return p


# --------------------------------- main -------------------------------------

if __name__ == "__main__":
    num_grid = 48          # smallest supported grid -> num_out_conv = 2
    num_feature = 4
    num_outputs = 6
    at_size = 32
    num_out_conv = 2
    batch_size, sequence_length = 1, 2   # 2 images total

    key = jax.random.PRNGKey(0)
    pkey, xkey = jax.random.split(key)
    params = init_params(pkey, num_feature, num_outputs, at_size, num_out_conv)
    kparams = prepare_params(params)

    x = jax.random.normal(xkey, (batch_size * sequence_length, num_feature,
                                 num_grid, num_grid), jnp.float32)

    fwd = jax.jit(functools.partial(
        ddaqn_forward, batch_size=batch_size, sequence_length=sequence_length,
        num_feature=num_feature, num_grid=num_grid))
    out, hidden = fwd(kparams, x)
    out = jax.block_until_ready(out)

    assert out.shape == (batch_size, sequence_length, num_outputs)
    assert bool(jnp.all(jnp.isfinite(out)))
    # log-softmax over dim=1 (sequence dim), exactly as the PyTorch module does
    sums = jnp.exp(out).sum(axis=1)
    assert bool(jnp.allclose(sums, 1.0, atol=1e-4))
    print("KERNEL_OK")
</pallas_src>

<mosaic_0001>
module attributes {stable_mosaic.version = 11 : i64} {
  func.func @_gemm_kernel(%arg0: i32, %arg1: memref<242x256xf32, #tpu.memory_space<vmem>>, %arg2: memref<256x32xbf16, #tpu.memory_space<vmem>>, %arg3: memref<1x32xf32, #tpu.memory_space<vmem>>, %arg4: memref<242x32xf32, #tpu.memory_space<vmem>>) attributes {dimension_semantics = [#tpu.dimension_semantics<arbitrary>], iteration_bounds = array<i64: 1>, scalar_prefetch = 0 : i64, scratch_operands = 0 : i64, tpu.core_type = #tpu.core_type<tc>, window_params = [{pipeline_mode = #tpu.pipeline_mode<synchronous>, transform_indices = @transform_0, window_bounds = array<i64: 242, 256>}, {pipeline_mode = #tpu.pipeline_mode<synchronous>, transform_indices = @transform_1, window_bounds = array<i64: 256, 32>}, {pipeline_mode = #tpu.pipeline_mode<synchronous>, transform_indices = @transform_2, window_bounds = array<i64: 1, 32>}, {pipeline_mode = #tpu.pipeline_mode<synchronous>, transform_indices = @transform_3, window_bounds = array<i64: 242, 32>}]} {
    %c0 = arith.constant 0 : index
    %c0_0 = arith.constant 0 : index
    %0 = vector.load %arg1[%c0, %c0_0] : memref<242x256xf32, #tpu.memory_space<vmem>>, vector<242x256xf32>
    %1 = arith.truncf %0 : vector<242x256xf32> to vector<242x256xbf16>
    %c0_1 = arith.constant 0 : index
    %c0_2 = arith.constant 0 : index
    %2 = vector.load %arg2[%c0_1, %c0_2] : memref<256x32xbf16, #tpu.memory_space<vmem>>, vector<256x32xbf16>
    %cst = arith.constant dense<0.000000e+00> : vector<242x32xf32>
    %3 = tpu.matmul %1, %2, %cst {dimension_numbers = #tpu.dot_dimension_numbers<[1], [0], [0], [1], [0, 0, 1, 1], [], []>} : vector<242x256xbf16>, vector<256x32xbf16>, vector<242x32xf32> -> vector<242x32xf32>
    %c0_3 = arith.constant 0 : index
    %c0_4 = arith.constant 0 : index
    %4 = vector.load %arg3[%c0_3, %c0_4] : memref<1x32xf32, #tpu.memory_space<vmem>>, vector<1x32xf32>
    %5 = vector.broadcast %4 : vector<1x32xf32> to vector<242x32xf32>
    %6 = arith.addf %3, %5 : vector<242x32xf32>
    %cst_5 = arith.constant 0.000000e+00 : f32
    %7 = vector.broadcast %cst_5 : f32 to vector<242x32xf32>
    %8 = arith.maximumf %6, %7 : vector<242x32xf32>
    %c0_6 = arith.constant 0 : index
    %c0_7 = arith.constant 0 : index
    %9 = vector.load %arg4[%c0_6, %c0_7] : memref<242x32xf32, #tpu.memory_space<vmem>>, vector<242x32xf32>
    tpu.vector_store %arg4[%c0_6, %c0_7], %8 {strides = array<i32>} : memref<242x32xf32, #tpu.memory_space<vmem>>, vector<242x32xf32>,
    return
  }
  func.func @transform_0(%arg0: i32) -> (i32, i32) {
    %c0_i32 = arith.constant 0 : i32
    %c0_i32_0 = arith.constant 0 : i32
    %c0_i32_1 = arith.constant 0 : i32
    return %c0_i32, %c0_i32_0 : i32, i32
  }
  func.func @transform_1(%arg0: i32) -> (i32, i32) {
    %c0_i32 = arith.constant 0 : i32
    %c0_i32_0 = arith.constant 0 : i32
    %c0_i32_1 = arith.constant 0 : i32
    return %c0_i32, %c0_i32_0 : i32, i32
  }
  func.func @transform_2(%arg0: i32) -> (i32, i32) {
    %c0_i32 = arith.constant 0 : i32
    %c0_i32_0 = arith.constant 0 : i32
    %c0_i32_1 = arith.constant 0 : i32
    return %c0_i32, %c0_i32_0 : i32, i32
  }
  func.func @transform_3(%arg0: i32) -> (i32, i32) {
    %c0_i32 = arith.constant 0 : i32
    %c0_i32_0 = arith.constant 0 : i32
    %c0_i32_1 = arith.constant 0 : i32
    return %c0_i32, %c0_i32_0 : i32, i32
  }
}

module attributes {stable_mosaic.version = 11 : i64} {
  func.func @_gemm_kernel(%arg0: i32, %arg1: memref<32x512xf32, #tpu.memory_space<vmem>>, %arg2: memref<512x64xbf16, #tpu.memory_space<vmem>>, %arg3: memref<1x64xf32, #tpu.memory_space<vmem>>, %arg4: memref<32x64xf32, #tpu.memory_space<vmem>>) attributes {dimension_semantics = [#tpu.dimension_semantics<arbitrary>], iteration_bounds = array<i64: 1>, scalar_prefetch = 0 : i64, scratch_operands = 0 : i64, tpu.core_type = #tpu.core_type<tc>, window_params = [{pipeline_mode = #tpu.pipeline_mode<synchronous>, transform_indices = @transform_0, window_bounds = array<i64: 32, 512>}, {pipeline_mode = #tpu.pipeline_mode<synchronous>, transform_indices = @transform_1, window_bounds = array<i64: 512, 64>}, {pipeline_mode = #tpu.pipeline_mode<synchronous>, transform_indices = @transform_2, window_bounds = array<i64: 1, 64>}, {pipeline_mode = #tpu.pipeline_mode<synchronous>, transform_indices = @transform_3, window_bounds = array<i64: 32, 64>}]} {
    %c0 = arith.constant 0 : index
    %c0_0 = arith.constant 0 : index
    %0 = vector.load %arg1[%c0, %c0_0] : memref<32x512xf32, #tpu.memory_space<vmem>>, vector<32x512xf32>
    %1 = arith.truncf %0 : vector<32x512xf32> to vector<32x512xbf16>
    %c0_1 = arith.constant 0 : index
    %c0_2 = arith.constant 0 : index
    %2 = vector.load %arg2[%c0_1, %c0_2] : memref<512x64xbf16, #tpu.memory_space<vmem>>, vector<512x64xbf16>
    %cst = arith.constant dense<0.000000e+00> : vector<32x64xf32>
    %3 = tpu.matmul %1, %2, %cst {dimension_numbers = #tpu.dot_dimension_numbers<[1], [0], [0], [1], [0, 0, 1, 1], [], []>} : vector<32x512xbf16>, vector<512x64xbf16>, vector<32x64xf32> -> vector<32x64xf32>
    %c0_3 = arith.constant 0 : index
    %c0_4 = arith.constant 0 : index
    %4 = vector.load %arg3[%c0_3, %c0_4] : memref<1x64xf32, #tpu.memory_space<vmem>>, vector<1x64xf32>
    %5 = vector.broadcast %4 : vector<1x64xf32> to vector<32x64xf32>
    %6 = arith.addf %3, %5 : vector<32x64xf32>
    %cst_5 = arith.constant 0.000000e+00 : f32
    %7 = vector.broadcast %cst_5 : f32 to vector<32x64xf32>
    %8 = arith.maximumf %6, %7 : vector<32x64xf32>
    %c0_6 = arith.constant 0 : index
    %c0_7 = arith.constant 0 : index
    %9 = vector.load %arg4[%c0_6, %c0_7] : memref<32x64xf32, #tpu.memory_space<vmem>>, vector<32x64xf32>
    tpu.vector_store %arg4[%c0_6, %c0_7], %8 {strides = array<i32>} : memref<32x64xf32, #tpu.memory_space<vmem>>, vector<32x64xf32>,
    return
  }
  func.func @transform_0(%arg0: i32) -> (i32, i32) {
    %c0_i32 = arith.constant 0 : i32
    %c0_i32_0 = arith.constant 0 : i32
    %c0_i32_1 = arith.constant 0 : i32
    return %c0_i32, %c0_i32_0 : i32, i32
  }
  func.func @transform_1(%arg0: i32) -> (i32, i32) {
    %c0_i32 = arith.constant 0 : i32
    %c0_i32_0 = arith.constant 0 : i32
    %c0_i32_1 = arith.constant 0 : i32
    return %c0_i32, %c0_i32_0 : i32, i32
  }
  func.func @transform_2(%arg0: i32) -> (i32, i32) {
    %c0_i32 = arith.constant 0 : i32
    %c0_i32_0 = arith.constant 0 : i32
    %c0_i32_1 = arith.constant 0 : i32
    return %c0_i32, %c0_i32_0 : i32, i32
  }
  func.func @transform_3(%arg0: i32) -> (i32, i32) {
    %c0_i32 = arith.constant 0 : i32
    %c0_i32_0 = arith.constant 0 : i32
    %c0_i32_1 = arith.constant 0 : i32
    return %c0_i32, %c0_i32_0 : i32, i32
  }
}

module attributes {stable_mosaic.version = 11 : i64} {
  func.func @_gemm_kernel(%arg0: i32, %arg1: memref<8x576xf32, #tpu.memory_space<vmem>>, %arg2: memref<576x32xbf16, #tpu.memory_space<vmem>>, %arg3: memref<1x32xf32, #tpu.memory_space<vmem>>, %arg4: memref<8x32xf32, #tpu.memory_space<vmem>>) attributes {dimension_semantics = [#tpu.dimension_semantics<arbitrary>], iteration_bounds = array<i64: 1>, scalar_prefetch = 0 : i64, scratch_operands = 0 : i64, tpu.core_type = #tpu.core_type<tc>, window_params = [{pipeline_mode = #tpu.pipeline_mode<synchronous>, transform_indices = @transform_0, window_bounds = array<i64: 8, 576>}, {pipeline_mode = #tpu.pipeline_mode<synchronous>, transform_indices = @transform_1, window_bounds = array<i64: 576, 32>}, {pipeline_mode = #tpu.pipeline_mode<synchronous>, transform_indices = @transform_2, window_bounds = array<i64: 1, 32>}, {pipeline_mode = #tpu.pipeline_mode<synchronous>, transform_indices = @transform_3, window_bounds = array<i64: 8, 32>}]} {
    %c0 = arith.constant 0 : index
    %c0_0 = arith.constant 0 : index
    %0 = vector.load %arg1[%c0, %c0_0] : memref<8x576xf32, #tpu.memory_space<vmem>>, vector<8x576xf32>
    %1 = arith.truncf %0 : vector<8x576xf32> to vector<8x576xbf16>
    %c0_1 = arith.constant 0 : index
    %c0_2 = arith.constant 0 : index
    %2 = vector.load %arg2[%c0_1, %c0_2] : memref<576x32xbf16, #tpu.memory_space<vmem>>, vector<576x32xbf16>
    %cst = arith.constant dense<0.000000e+00> : vector<8x32xf32>
    %3 = tpu.matmul %1, %2, %cst {dimension_numbers = #tpu.dot_dimension_numbers<[1], [0], [0], [1], [0, 0, 1, 1], [], []>} : vector<8x576xbf16>, vector<576x32xbf16>, vector<8x32xf32> -> vector<8x32xf32>
    %c0_3 = arith.constant 0 : index
    %c0_4 = arith.constant 0 : index
    %4 = vector.load %arg3[%c0_3, %c0_4] : memref<1x32xf32, #tpu.memory_space<vmem>>, vector<1x32xf32>
    %5 = vector.broadcast %4 : vector<1x32xf32> to vector<8x32xf32>
    %6 = arith.addf %3, %5 : vector<8x32xf32>
    %cst_5 = arith.constant 0.000000e+00 : f32
    %7 = vector.broadcast %cst_5 : f32 to vector<8x32xf32>
    %8 = arith.maximumf %6, %7 : vector<8x32xf32>
    %c0_6 = arith.constant 0 : index
    %c0_7 = arith.constant 0 : index
    %9 = vector.load %arg4[%c0_6, %c0_7] : memref<8x32xf32, #tpu.memory_space<vmem>>, vector<8x32xf32>
    tpu.vector_store %arg4[%c0_6, %c0_7], %8 {strides = array<i32>} : memref<8x32xf32, #tpu.memory_space<vmem>>, vector<8x32xf32>,
    return
  }
  func.func @transform_0(%arg0: i32) -> (i32, i32) {
    %c0_i32 = arith.constant 0 : i32
    %c0_i32_0 = arith.constant 0 : i32
    %c0_i32_1 = arith.constant 0 : i32
    return %c0_i32, %c0_i32_0 : i32, i32
  }
  func.func @transform_1(%arg0: i32) -> (i32, i32) {
    %c0_i32 = arith.constant 0 : i32
    %c0_i32_0 = arith.constant 0 : i32
    %c0_i32_1 = arith.constant 0 : i32
    return %c0_i32, %c0_i32_0 : i32, i32
  }
  func.func @transform_2(%arg0: i32) -> (i32, i32) {
    %c0_i32 = arith.constant 0 : i32
    %c0_i32_0 = arith.constant 0 : i32
    %c0_i32_1 = arith.constant 0 : i32
    return %c0_i32, %c0_i32_0 : i32, i32
  }
  func.func @transform_3(%arg0: i32) -> (i32, i32) {
    %c0_i32 = arith.constant 0 : i32
    %c0_i32_0 = arith.constant 0 : i32
    %c0_i32_1 = arith.constant 0 : i32
    return %c0_i32, %c0_i32_0 : i32, i32
  }
}

module attributes {stable_mosaic.version = 11 : i64} {
  func.func @_da_kernel(%arg0: i32, %arg1: memref<1x4x288xf32, #tpu.memory_space<vmem>>, %arg2: memref<1x288x4xf32, #tpu.memory_space<vmem>>, %arg3: memref<288x32xbf16, #tpu.memory_space<vmem>>, %arg4: memref<1x32xf32, #tpu.memory_space<vmem>>, %arg5: memref<288x32xbf16, #tpu.memory_space<vmem>>, %arg6: memref<1x32xf32, #tpu.memory_space<vmem>>, %arg7: memref<32x288xbf16, #tpu.memory_space<vmem>>, %arg8: memref<32x1xf32, #tpu.memory_space<vmem>>, %arg9: memref<32x96xbf16, #tpu.memory_space<vmem>>, %arg10: memref<1x96xf32, #tpu.memory_space<vmem>>, %arg11: memref<32x32xbf16, #tpu.memory_space<vmem>>, %arg12: memref<1x32xf32, #tpu.memory_space<vmem>>, %arg13: memref<4x4xf32, #tpu.memory_space<vmem>>, %arg14: memref<4x1xf32, #tpu.memory_space<vmem>>, %arg15: memref<1x4x32xf32, #tpu.memory_space<vmem>>) attributes {dimension_semantics = [#tpu.dimension_semantics<parallel>], iteration_bounds = array<i64: 2>, scalar_prefetch = 0 : i64, scratch_operands = 0 : i64, tpu.core_type = #tpu.core_type<tc>, window_params = [{transform_indices = @transform_0, window_bounds = array<i64: 1, 4, 288>}, {transform_indices = @transform_1, window_bounds = array<i64: 1, 288, 4>}, {pipeline_mode = #tpu.pipeline_mode<synchronous>, transform_indices = @transform_2, window_bounds = array<i64: 288, 32>}, {pipeline_mode = #tpu.pipeline_mode<synchronous>, transform_indices = @transform_3, window_bounds = array<i64: 1, 32>}, {pipeline_mode = #tpu.pipeline_mode<synchronous>, transform_indices = @transform_4, window_bounds = array<i64: 288, 32>}, {pipeline_mode = #tpu.pipeline_mode<synchronous>, transform_indices = @transform_5, window_bounds = array<i64: 1, 32>}, {pipeline_mode = #tpu.pipeline_mode<synchronous>, transform_indices = @transform_6, window_bounds = array<i64: 32, 288>}, {pipeline_mode = #tpu.pipeline_mode<synchronous>, transform_indices = @transform_7, window_bounds = array<i64: 32, 1>}, {pipeline_mode = #tpu.pipeline_mode<synchronous>, transform_indices = @transform_8, window_bounds = array<i64: 32, 96>}, {pipeline_mode = #tpu.pipeline_mode<synchronous>, transform_indices = @transform_9, window_bounds = array<i64: 1, 96>}, {pipeline_mode = #tpu.pipeline_mode<synchronous>, transform_indices = @transform_10, window_bounds = array<i64: 32, 32>}, {pipeline_mode = #tpu.pipeline_mode<synchronous>, transform_indices = @transform_11, window_bounds = array<i64: 1, 32>}, {pipeline_mode = #tpu.pipeline_mode<synchronous>, transform_indices = @transform_12, window_bounds = array<i64: 4, 4>}, {pipeline_mode = #tpu.pipeline_mode<synchronous>, transform_indices = @transform_13, window_bounds = array<i64: 4, 1>}, {transform_indices = @transform_14, window_bounds = array<i64: 1, 4, 32>}]} {
    %c0 = arith.constant 0 : index
    %c0_0 = arith.constant 0 : index
    %c0_1 = arith.constant 0 : index
    %0 = vector.load %arg1[%c0, %c0_0, %c0_1] : memref<1x4x288xf32, #tpu.memory_space<vmem>>, vector<1x4x288xf32>
    %1 = vector.shape_cast %0 : vector<1x4x288xf32> to vector<4x288xf32>
    %2 = arith.truncf %1 : vector<4x288xf32> to vector<4x288xbf16>
    %c0_2 = arith.constant 0 : index
    %c0_3 = arith.constant 0 : index
    %c0_4 = arith.constant 0 : index
    %3 = vector.load %arg2[%c0_2, %c0_3, %c0_4] : memref<1x288x4xf32, #tpu.memory_space<vmem>>, vector<1x288x4xf32>
    %4 = vector.shape_cast %3 : vector<1x288x4xf32> to vector<288x4xf32>
    %5 = arith.truncf %4 : vector<288x4xf32> to vector<288x4xbf16>
    %c0_5 = arith.constant 0 : index
    %c0_6 = arith.constant 0 : index
    %6 = vector.load %arg3[%c0_5, %c0_6] : memref<288x32xbf16, #tpu.memory_space<vmem>>, vector<288x32xbf16>
    %cst = arith.constant dense<0.000000e+00> : vector<4x32xf32>
    %7 = tpu.matmul %2, %6, %cst {dimension_numbers = #tpu.dot_dimension_numbers<[1], [0], [0], [1], [0, 0, 1, 1], [], []>} : vector<4x288xbf16>, vector<288x32xbf16>, vector<4x32xf32> -> vector<4x32xf32>
    %c0_7 = arith.constant 0 : index
    %c0_8 = arith.constant 0 : index
    %8 = vector.load %arg4[%c0_7, %c0_8] : memref<1x32xf32, #tpu.memory_space<vmem>>, vector<1x32xf32>
    %9 = vector.broadcast %8 : vector<1x32xf32> to vector<4x32xf32>
    %10 = arith.addf %7, %9 : vector<4x32xf32>
    %c0_9 = arith.constant 0 : index
    %c0_10 = arith.constant 0 : index
    %11 = vector.load %arg5[%c0_9, %c0_10] : memref<288x32xbf16, #tpu.memory_space<vmem>>, vector<288x32xbf16>
    %cst_11 = arith.constant dense<0.000000e+00> : vector<4x32xf32>
    %12 = tpu.matmul %2, %11, %cst_11 {dimension_numbers = #tpu.dot_dimension_numbers<[1], [0], [0], [1], [0, 0, 1, 1], [], []>} : vector<4x288xbf16>, vector<288x32xbf16>, vector<4x32xf32> -> vector<4x32xf32>
    %c0_12 = arith.constant 0 : index
    %c0_13 = arith.constant 0 : index
    %13 = vector.load %arg6[%c0_12, %c0_13] : memref<1x32xf32, #tpu.memory_space<vmem>>, vector<1x32xf32>
    %14 = vector.broadcast %13 : vector<1x32xf32> to vector<4x32xf32>
    %15 = arith.addf %12, %14 : vector<4x32xf32>
    %c0_14 = arith.constant 0 : index
    %c0_15 = arith.constant 0 : index
    %16 = vector.load %arg7[%c0_14, %c0_15] : memref<32x288xbf16, #tpu.memory_space<vmem>>, vector<32x288xbf16>
    %cst_16 = arith.constant dense<0.000000e+00> : vector<32x4xf32>
    %17 = tpu.matmul %16, %5, %cst_16 {dimension_numbers = #tpu.dot_dimension_numbers<[1], [0], [0], [1], [0, 0, 1, 1], [], []>} : vector<32x288xbf16>, vector<288x4xbf16>, vector<32x4xf32> -> vector<32x4xf32>
    %c0_17 = arith.constant 0 : index
    %c0_18 = arith.constant 0 : index
    %18 = vector.load %arg8[%c0_17, %c0_18] : memref<32x1xf32, #tpu.memory_space<vmem>>, vector<32x1xf32>
    %19 = vector.broadcast %18 : vector<32x1xf32> to vector<32x4xf32>
    %20 = arith.addf %17, %19 : vector<32x4xf32>
    %21 = arith.truncf %10 : vector<4x32xf32> to vector<4x32xbf16>
    %c0_19 = arith.constant 0 : index
    %c0_20 = arith.constant 0 : index
    %22 = vector.load %arg9[%c0_19, %c0_20] : memref<32x96xbf16, #tpu.memory_space<vmem>>, vector<32x96xbf16>
    %cst_21 = arith.constant dense<0.000000e+00> : vector<4x96xf32>
    %23 = tpu.matmul %21, %22, %cst_21 {dimension_numbers = #tpu.dot_dimension_numbers<[1], [0], [0], [1], [0, 0, 1, 1], [], []>} : vector<4x32xbf16>, vector<32x96xbf16>, vector<4x96xf32> -> vector<4x96xf32>
    %c0_22 = arith.constant 0 : index
    %c0_23 = arith.constant 0 : index
    %24 = vector.load %arg10[%c0_22, %c0_23] : memref<1x96xf32, #tpu.memory_space<vmem>>, vector<1x96xf32>
    %25 = vector.broadcast %24 : vector<1x96xf32> to vector<4x96xf32>
    %26 = arith.addf %23, %25 : vector<4x96xf32>
    %27 = vector.extract_strided_slice %26 {offsets = [0, 0], sizes = [4, 32], strides = [1, 1]} : vector<4x96xf32> to vector<4x32xf32>
    %28 = vector.extract_strided_slice %26 {offsets = [0, 32], sizes = [4, 32], strides = [1, 1]} : vector<4x96xf32> to vector<4x32xf32>
    %29 = vector.extract_strided_slice %26 {offsets = [0, 64], sizes = [4, 32], strides = [1, 1]} : vector<4x96xf32> to vector<4x32xf32>
    %cst_24 = arith.constant dense<0.000000e+00> : vector<4x4xf32>
    %30 = tpu.matmul %27, %28, %cst_24 {dimension_numbers = #tpu.dot_dimension_numbers<[1], [1], [0], [0], [0, 0, 1, 0], [], []>} : vector<4x32xf32>, vector<4x32xf32>, vector<4x4xf32> -> vector<4x4xf32>
    %cst_25 = arith.constant 0.176776692 : f32
    %31 = vector.broadcast %cst_25 : f32 to vector<4x4xf32>
    %32 = arith.mulf %30, %31 : vector<4x4xf32>
    %cst_26 = arith.constant dense<0xFF800000> : vector<4xf32>
    %33 = vector.multi_reduction <maximumf>, %32, %cst_26 [1] : vector<4x4xf32> to vector<4xf32>
    %34 = vector.shape_cast %33 : vector<4xf32> to vector<4x1xf32>
    %35 = vector.broadcast %34 : vector<4x1xf32> to vector<4x4xf32>
    %36 = arith.subf %32, %35 : vector<4x4xf32>
    %37 = math.exp %36 : vector<4x4xf32>
    %cst_27 = arith.constant dense<0.000000e+00> : vector<4xf32>
    %38 = vector.multi_reduction <add>, %37, %cst_27 [1] : vector<4x4xf32> to vector<4xf32>
    %39 = vector.shape_cast %38 : vector<4xf32> to vector<4x1xf32>
    %40 = tpu.reciprocal %39 {approx = true} : vector<4x1xf32> -> vector<4x1xf32>
    %41 = vector.broadcast %40 : vector<4x1xf32> to vector<4x4xf32>
    %42 = arith.mulf %37, %41 : vector<4x4xf32>
    %cst_28 = arith.constant dense<0.000000e+00> : vector<4x32xf32>
    %43 = tpu.matmul %42, %29, %cst_28 {dimension_numbers = #tpu.dot_dimension_numbers<[1], [0], [0], [1], [0, 0, 1, 1], [], []>} : vector<4x4xf32>, vector<4x32xf32>, vector<4x32xf32> -> vector<4x32xf32>
    %44 = arith.truncf %43 : vector<4x32xf32> to vector<4x32xbf16>
    %c0_29 = arith.constant 0 : index
    %c0_30 = arith.constant 0 : index
    %45 = vector.load %arg11[%c0_29, %c0_30] : memref<32x32xbf16, #tpu.memory_space<vmem>>, vector<32x32xbf16>
    %cst_31 = arith.constant dense<0.000000e+00> : vector<4x32xf32>
    %46 = tpu.matmul %44, %45, %cst_31 {dimension_numbers = #tpu.dot_dimension_numbers<[1], [0], [0], [1], [0, 0, 1, 1], [], []>} : vector<4x32xbf16>, vector<32x32xbf16>, vector<4x32xf32> -> vector<4x32xf32>
    %c0_32 = arith.constant 0 : index
    %c0_33 = arith.constant 0 : index
    %47 = vector.load %arg12[%c0_32, %c0_33] : memref<1x32xf32, #tpu.memory_space<vmem>>, vector<1x32xf32>
    %48 = vector.broadcast %47 : vector<1x32xf32> to vector<4x32xf32>
    %49 = arith.addf %46, %48 : vector<4x32xf32>
    %cst_34 = arith.constant dense<0.000000e+00> : vector<32x32xf32>
    %50 = tpu.matmul %20, %20, %cst_34 {dimension_numbers = #tpu.dot_dimension_numbers<[1], [1], [0], [0], [0, 0, 1, 0], [], []>} : vector<32x4xf32>, vector<32x4xf32>, vector<32x32xf32> -> vector<32x32xf32>
    %cst_35 = arith.constant 5.000000e-01 : f32
    %51 = vector.broadcast %cst_35 : f32 to vector<32x32xf32>
    %52 = arith.mulf %50, %51 : vector<32x32xf32>
    %cst_36 = arith.constant dense<0xFF800000> : vector<32xf32>
    %53 = vector.multi_reduction <maximumf>, %52, %cst_36 [1] : vector<32x32xf32> to vector<32xf32>
    %54 = vector.shape_cast %53 : vector<32xf32> to vector<32x1xf32>
    %55 = vector.broadcast %54 : vector<32x1xf32> to vector<32x32xf32>
    %56 = arith.subf %52, %55 : vector<32x32xf32>
    %57 = math.exp %56 : vector<32x32xf32>
    %cst_37 = arith.constant dense<0.000000e+00> : vector<32xf32>
    %58 = vector.multi_reduction <add>, %57, %cst_37 [1] : vector<32x32xf32> to vector<32xf32>
    %59 = vector.shape_cast %58 : vector<32xf32> to vector<32x1xf32>
    %60 = tpu.reciprocal %59 {approx = true} : vector<32x1xf32> -> vector<32x1xf32>
    %61 = vector.broadcast %60 : vector<32x1xf32> to vector<32x32xf32>
    %62 = arith.mulf %57, %61 : vector<32x32xf32>
    %cst_38 = arith.constant dense<0.000000e+00> : vector<4x32xf32>
    %63 = tpu.matmul %15, %62, %cst_38 {dimension_numbers = #tpu.dot_dimension_numbers<[1], [1], [0], [0], [0, 0, 1, 0], [], []>} : vector<4x32xf32>, vector<32x32xf32>, vector<4x32xf32> -> vector<4x32xf32>
    %c0_39 = arith.constant 0 : index
    %c0_40 = arith.constant 0 : index
    %64 = vector.load %arg13[%c0_39, %c0_40] : memref<4x4xf32, #tpu.memory_space<vmem>>, vector<4x4xf32>
    %cst_41 = arith.constant dense<0.000000e+00> : vector<4x32xf32>
    %65 = tpu.matmul %64, %63, %cst_41 {dimension_numbers = #tpu.dot_dimension_numbers<[1], [0], [0], [1], [0, 0, 1, 1], [], []>} : vector<4x4xf32>, vector<4x32xf32>, vector<4x32xf32> -> vector<4x32xf32>
    %c0_42 = arith.constant 0 : index
    %c0_43 = arith.constant 0 : index
    %66 = vector.load %arg14[%c0_42, %c0_43] : memref<4x1xf32, #tpu.memory_space<vmem>>, vector<4x1xf32>
    %67 = vector.broadcast %66 : vector<4x1xf32> to vector<4x32xf32>
    %68 = arith.addf %65, %67 : vector<4x32xf32>
    %69 = arith.addf %49, %68 : vector<4x32xf32>
    %c0_44 = arith.constant 0 : index
    %c0_45 = arith.constant 0 : index
    %c0_46 = arith.constant 0 : index
    %70 = vector.load %arg15[%c0_44, %c0_45, %c0_46] : memref<1x4x32xf32, #tpu.memory_space<vmem>>, vector<1x4x32xf32>
    %71 = vector.shape_cast %70 : vector<1x4x32xf32> to vector<4x32xf32>
    %72 = vector.shape_cast %69 : vector<4x32xf32> to vector<1x4x32xf32>
    tpu.vector_store %arg15[%c0_44, %c0_45, %c0_46], %72 {strides = array<i32>} : memref<1x4x32xf32, #tpu.memory_space<vmem>>, vector<1x4x32xf32>,
    return
  }
  func.func @transform_0(%arg0: i32) -> (i32, i32, i32) {
    %c0_i32 = arith.constant 0 : i32
    %c0_i32_0 = arith.constant 0 : i32
    %c0_i32_1 = arith.constant 0 : i32
    return %arg0, %c0_i32, %c0_i32_0 : i32, i32, i32
  }
  func.func @transform_1(%arg0: i32) -> (i32, i32, i32) {
    %c0_i32 = arith.constant 0 : i32
    %c0_i32_0 = arith.constant 0 : i32
    %c0_i32_1 = arith.constant 0 : i32
    return %arg0, %c0_i32, %c0_i32_0 : i32, i32, i32
  }
  func.func @transform_2(%arg0: i32) -> (i32, i32) {
    %c0_i32 = arith.constant 0 : i32
    %c0_i32_0 = arith.constant 0 : i32
    %c0_i32_1 = arith.constant 0 : i32
    return %c0_i32, %c0_i32_0 : i32, i32
  }
  func.func @transform_3(%arg0: i32) -> (i32, i32) {
    %c0_i32 = arith.constant 0 : i32
    %c0_i32_0 = arith.constant 0 : i32
    %c0_i32_1 = arith.constant 0 : i32
    return %c0_i32, %c0_i32_0 : i32, i32
  }
  func.func @transform_4(%arg0: i32) -> (i32, i32) {
    %c0_i32 = arith.constant 0 : i32
    %c0_i32_0 = arith.constant 0 : i32
    %c0_i32_1 = arith.constant 0 : i32
    return %c0_i32, %c0_i32_0 : i32, i32
  }
  func.func @transform_5(%arg0: i32) -> (i32, i32) {
    %c0_i32 = arith.constant 0 : i32
    %c0_i32_0 = arith.constant 0 : i32
    %c0_i32_1 = arith.constant 0 : i32
    return %c0_i32, %c0_i32_0 : i32, i32
  }
  func.func @transform_6(%arg0: i32) -> (i32, i32) {
    %c0_i32 = arith.constant 0 : i32
    %c0_i32_0 = arith.constant 0 : i32
    %c0_i32_1 = arith.constant 0 : i32
    return %c0_i32, %c0_i32_0 : i32, i32
  }
  func.func @transform_7(%arg0: i32) -> (i32, i32) {
    %c0_i32 = arith.constant 0 : i32
    %c0_i32_0 = arith.constant 0 : i32
    %c0_i32_1 = arith.constant 0 : i32
    return %c0_i32, %c0_i32_0 : i32, i32
  }
  func.func @transform_8(%arg0: i32) -> (i32, i32) {
    %c0_i32 = arith.constant 0 : i32
    %c0_i32_0 = arith.constant 0 : i32
    %c0_i32_1 = arith.constant 0 : i32
    return %c0_i32, %c0_i32_0 : i32, i32
  }
  func.func @transform_9(%arg0: i32) -> (i32, i32) {
    %c0_i32 = arith.constant 0 : i32
    %c0_i32_0 = arith.constant 0 : i32
    %c0_i32_1 = arith.constant 0 : i32
    return %c0_i32, %c0_i32_0 : i32, i32
  }
  func.func @transform_10(%arg0: i32) -> (i32, i32) {
    %c0_i32 = arith.constant 0 : i32
    %c0_i32_0 = arith.constant 0 : i32
    %c0_i32_1 = arith.constant 0 : i32
    return %c0_i32, %c0_i32_0 : i32, i32
  }
  func.func @transform_11(%arg0: i32) -> (i32, i32) {
    %c0_i32 = arith.constant 0 : i32
    %c0_i32_0 = arith.constant 0 : i32
    %c0_i32_1 = arith.constant 0 : i32
    return %c0_i32, %c0_i32_0 : i32, i32
  }
  func.func @transform_12(%arg0: i32) -> (i32, i32) {
    %c0_i32 = arith.constant 0 : i32
    %c0_i32_0 = arith.constant 0 : i32
    %c0_i32_1 = arith.constant 0 : i32
    return %c0_i32, %c0_i32_0 : i32, i32
  }
  func.func @transform_13(%arg0: i32) -> (i32, i32) {
    %c0_i32 = arith.constant 0 : i32
    %c0_i32_0 = arith.constant 0 : i32
    %c0_i32_1 = arith.constant 0 : i32
    return %c0_i32, %c0_i32_0 : i32, i32
  }
  func.func @transform_14(%arg0: i32) -> (i32, i32, i32) {
    %c0_i32 = arith.constant 0 : i32
    %c0_i32_0 = arith.constant 0 : i32
    %c0_i32_1 = arith.constant 0 : i32
    return %arg0, %c0_i32, %c0_i32_0 : i32, i32, i32
  }
}

module attributes {stable_mosaic.version = 11 : i64} {
  func.func @_fc_tail_kernel(%arg0: i32, %arg1: memref<1x2x128xf32, #tpu.memory_space<vmem>>, %arg2: memref<128x512xbf16, #tpu.memory_space<vmem>>, %arg3: memref<1x512xf32, #tpu.memory_space<vmem>>, %arg4: memref<512x128xbf16, #tpu.memory_space<vmem>>, %arg5: memref<1x128xf32, #tpu.memory_space<vmem>>, %arg6: memref<128x6xbf16, #tpu.memory_space<vmem>>, %arg7: memref<1x6xf32, #tpu.memory_space<vmem>>, %arg8: memref<1x2x6xf32, #tpu.memory_space<vmem>>) attributes {dimension_semantics = [#tpu.dimension_semantics<parallel>], iteration_bounds = array<i64: 1>, scalar_prefetch = 0 : i64, scratch_operands = 0 : i64, tpu.core_type = #tpu.core_type<tc>, window_params = [{transform_indices = @transform_0, window_bounds = array<i64: 1, 2, 128>}, {pipeline_mode = #tpu.pipeline_mode<synchronous>, transform_indices = @transform_1, window_bounds = array<i64: 128, 512>}, {pipeline_mode = #tpu.pipeline_mode<synchronous>, transform_indices = @transform_2, window_bounds = array<i64: 1, 512>}, {pipeline_mode = #tpu.pipeline_mode<synchronous>, transform_indices = @transform_3, window_bounds = array<i64: 512, 128>}, {pipeline_mode = #tpu.pipeline_mode<synchronous>, transform_indices = @transform_4, window_bounds = array<i64: 1, 128>}, {pipeline_mode = #tpu.pipeline_mode<synchronous>, transform_indices = @transform_5, window_bounds = array<i64: 128, 6>}, {pipeline_mode = #tpu.pipeline_mode<synchronous>, transform_indices = @transform_6, window_bounds = array<i64: 1, 6>}, {transform_indices = @transform_7, window_bounds = array<i64: 1, 2, 6>}]} {
    %c0 = arith.constant 0 : index
    %c0_0 = arith.constant 0 : index
    %c0_1 = arith.constant 0 : index
    %0 = vector.load %arg1[%c0, %c0_0, %c0_1] : memref<1x2x128xf32, #tpu.memory_space<vmem>>, vector<1x2x128xf32>
    %1 = vector.shape_cast %0 : vector<1x2x128xf32> to vector<2x128xf32>
    %2 = arith.truncf %1 : vector<2x128xf32> to vector<2x128xbf16>
    %c0_2 = arith.constant 0 : index
    %c0_3 = arith.constant 0 : index
    %3 = vector.load %arg2[%c0_2, %c0_3] : memref<128x512xbf16, #tpu.memory_space<vmem>>, vector<128x512xbf16>
    %cst = arith.constant dense<0.000000e+00> : vector<2x512xf32>
    %4 = tpu.matmul %2, %3, %cst {dimension_numbers = #tpu.dot_dimension_numbers<[1], [0], [0], [1], [0, 0, 1, 1], [], []>} : vector<2x128xbf16>, vector<128x512xbf16>, vector<2x512xf32> -> vector<2x512xf32>
    %c0_4 = arith.constant 0 : index
    %c0_5 = arith.constant 0 : index
    %5 = vector.load %arg3[%c0_4, %c0_5] : memref<1x512xf32, #tpu.memory_space<vmem>>, vector<1x512xf32>
    %6 = vector.broadcast %5 : vector<1x512xf32> to vector<2x512xf32>
    %7 = arith.addf %4, %6 : vector<2x512xf32>
    %cst_6 = arith.constant 0.000000e+00 : f32
    %8 = vector.broadcast %cst_6 : f32 to vector<2x512xf32>
    %9 = arith.maximumf %7, %8 : vector<2x512xf32>
    %10 = arith.truncf %9 : vector<2x512xf32> to vector<2x512xbf16>
    %c0_7 = arith.constant 0 : index
    %c0_8 = arith.constant 0 : index
    %11 = vector.load %arg4[%c0_7, %c0_8] : memref<512x128xbf16, #tpu.memory_space<vmem>>, vector<512x128xbf16>
    %cst_9 = arith.constant dense<0.000000e+00> : vector<2x128xf32>
    %12 = tpu.matmul %10, %11, %cst_9 {dimension_numbers = #tpu.dot_dimension_numbers<[1], [0], [0], [1], [0, 0, 1, 1], [], []>} : vector<2x512xbf16>, vector<512x128xbf16>, vector<2x128xf32> -> vector<2x128xf32>
    %c0_10 = arith.constant 0 : index
    %c0_11 = arith.constant 0 : index
    %13 = vector.load %arg5[%c0_10, %c0_11] : memref<1x128xf32, #tpu.memory_space<vmem>>, vector<1x128xf32>
    %14 = vector.broadcast %13 : vector<1x128xf32> to vector<2x128xf32>
    %15 = arith.addf %12, %14 : vector<2x128xf32>
    %cst_12 = arith.constant 0.000000e+00 : f32
    %16 = vector.broadcast %cst_12 : f32 to vector<2x128xf32>
    %17 = arith.maximumf %15, %16 : vector<2x128xf32>
    %18 = arith.truncf %17 : vector<2x128xf32> to vector<2x128xbf16>
    %c0_13 = arith.constant 0 : index
    %c0_14 = arith.constant 0 : index
    %19 = vector.load %arg6[%c0_13, %c0_14] : memref<128x6xbf16, #tpu.memory_space<vmem>>, vector<128x6xbf16>
    %cst_15 = arith.constant dense<0.000000e+00> : vector<2x6xf32>
    %20 = tpu.matmul %18, %19, %cst_15 {dimension_numbers = #tpu.dot_dimension_numbers<[1], [0], [0], [1], [0, 0, 1, 1], [], []>} : vector<2x128xbf16>, vector<128x6xbf16>, vector<2x6xf32> -> vector<2x6xf32>
    %c0_16 = arith.constant 0 : index
    %c0_17 = arith.constant 0 : index
    %21 = vector.load %arg7[%c0_16, %c0_17] : memref<1x6xf32, #tpu.memory_space<vmem>>, vector<1x6xf32>
    %22 = vector.broadcast %21 : vector<1x6xf32> to vector<2x6xf32>
    %23 = arith.addf %20, %22 : vector<2x6xf32>
    %cst_18 = arith.constant dense<0xFF800000> : vector<6xf32>
    %24 = vector.multi_reduction <maximumf>, %23, %cst_18 [0] : vector<2x6xf32> to vector<6xf32>
    %25 = vector.shape_cast %24 : vector<6xf32> to vector<1x6xf32>
    %26 = vector.broadcast %25 : vector<1x6xf32> to vector<2x6xf32>
    %27 = arith.subf %23, %26 : vector<2x6xf32>
    %28 = math.exp %27 : vector<2x6xf32>
    %29 = vector.broadcast %25 : vector<1x6xf32> to vector<2x6xf32>
    %30 = arith.subf %23, %29 : vector<2x6xf32>
    %cst_19 = arith.constant dense<0.000000e+00> : vector<6xf32>
    %31 = vector.multi_reduction <add>, %28, %cst_19 [0] : vector<2x6xf32> to vector<6xf32>
    %32 = vector.shape_cast %31 : vector<6xf32> to vector<1x6xf32>
    %33 = math.log %32 : vector<1x6xf32>
    %34 = vector.broadcast %33 : vector<1x6xf32> to vector<2x6xf32>
    %35 = arith.subf %30, %34 : vector<2x6xf32>
    %c0_20 = arith.constant 0 : index
    %c0_21 = arith.constant 0 : index
    %c0_22 = arith.constant 0 : index
    %36 = vector.load %arg8[%c0_20, %c0_21, %c0_22] : memref<1x2x6xf32, #tpu.memory_space<vmem>>, vector<1x2x6xf32>
    %37 = vector.shape_cast %36 : vector<1x2x6xf32> to vector<2x6xf32>
    %38 = vector.shape_cast %35 : vector<2x6xf32> to vector<1x2x6xf32>
    tpu.vector_store %arg8[%c0_20, %c0_21, %c0_22], %38 {strides = array<i32>} : memref<1x2x6xf32, #tpu.memory_space<vmem>>, vector<1x2x6xf32>,
    return
  }
  func.func @transform_0(%arg0: i32) -> (i32, i32, i32) {
    %c0_i32 = arith.constant 0 : i32
    %c0_i32_0 = arith.constant 0 : i32
    %c0_i32_1 = arith.constant 0 : i32
    return %arg0, %c0_i32, %c0_i32_0 : i32, i32, i32
  }
  func.func @transform_1(%arg0: i32) -> (i32, i32) {
    %c0_i32 = arith.constant 0 : i32
    %c0_i32_0 = arith.constant 0 : i32
    %c0_i32_1 = arith.constant 0 : i32
    return %c0_i32, %c0_i32_0 : i32, i32
  }
  func.func @transform_2(%arg0: i32) -> (i32, i32) {
    %c0_i32 = arith.constant 0 : i32
    %c0_i32_0 = arith.constant 0 : i32
    %c0_i32_1 = arith.constant 0 : i32
    return %c0_i32, %c0_i32_0 : i32, i32
  }
  func.func @transform_3(%arg0: i32) -> (i32, i32) {
    %c0_i32 = arith.constant 0 : i32
    %c0_i32_0 = arith.constant 0 : i32
    %c0_i32_1 = arith.constant 0 : i32
    return %c0_i32, %c0_i32_0 : i32, i32
  }
  func.func @transform_4(%arg0: i32) -> (i32, i32) {
    %c0_i32 = arith.constant 0 : i32
    %c0_i32_0 = arith.constant 0 : i32
    %c0_i32_1 = arith.constant 0 : i32
    return %c0_i32, %c0_i32_0 : i32, i32
  }
  func.func @transform_5(%arg0: i32) -> (i32, i32) {
    %c0_i32 = arith.constant 0 : i32
    %c0_i32_0 = arith.constant 0 : i32
    %c0_i32_1 = arith.constant 0 : i32
    return %c0_i32, %c0_i32_0 : i32, i32
  }
  func.func @transform_6(%arg0: i32) -> (i32, i32) {
    %c0_i32 = arith.constant 0 : i32
    %c0_i32_0 = arith.constant 0 : i32
    %c0_i32_1 = arith.constant 0 : i32
    return %c0_i32, %c0_i32_0 : i32, i32
  }
  func.func @transform_7(%arg0: i32) -> (i32, i32, i32) {
    %c0_i32 = arith.constant 0 : i32
    %c0_i32_0 = arith.constant 0 : i32
    %c0_i32_1 = arith.constant 0 : i32
    return %arg0, %c0_i32, %c0_i32_0 : i32, i32, i32
  }
}

</mosaic_0001>

<bundles_post_ra>
// kernel: ddaqn_forward.5
= control target key start
LH: loop header
LB: loop body
LE: loop exit
PB: predicated region body
PF: predicated region fallthrough
CT: control target
= control target key end

     0   :  { %vm435_vm0 = vcmask 261120   ;;  %vm466_vm1 = vcmask 254976   ;;  %s1046_s1 = inlined_call_operand.vmem [shape: bf16[256,32], index: 1, kind: input, shape index: {}]   ;;  %s1047_s0 = inlined_call_operand.vmem [shape: f32[242,256], index: 0, kind: input, shape index: {}]   ;;  %s1048_s2 = inlined_call_operand.vmem [shape: f32[1,32], index: 2, kind: input, shape index: {}]   ;;  %s1049_s3 = inlined_call_operand.vmem [shape: f32[242,32], index: 3, kind: output, shape index: {}]  }
   0x1   :  { %v617_v0 = vld [vmem:[%s1046_s1 + $0x40] sm:$0xff]   ;;  %v619_v2 = vld [vmem:[%s1046_s1 + $0x48] sm:$0xff]   ;;  %v621_v4 = vld [vmem:[%s1046_s1 + $0x50] sm:$0xff]  }
   0x2   :  { %v618_v1 = vld [vmem:[%s1046_s1] sm:$0xff]   ;;  %489 = vmatprep.subr.bf16.mxu0 %v617_v0  ;;  %601 = vmatprep.subr.bf16.mxu1 %v617_v0  ;;  %v620_v3 = vld [vmem:[%s1046_s1 + $0x8] sm:$0xff]   ;;  %v622_v5 = vld [vmem:[%s1046_s1 + $0x10] sm:$0xff]  }
   0x3   :  { %490 = vmatpush3.bf16.msra.mxu0 %v618_v1  ;;  %609 = vmatpush3.bf16.msra.mxu1 %v618_v1  ;;  %v623_v6 = vld [vmem:[%s1046_s1 + $0x58] sm:$0xff]   ;;  %v625_v8 = vld [vmem:[%s1046_s1 + $0x60] sm:$0xff]   ;;  %v627_v10 = vld [vmem:[%s1046_s1 + $0x68] sm:$0xff]  }
   0x4   :  { %491 = vmatprep.subr.bf16.mxu0 %v619_v2  ;;  %602 = vmatprep.subr.bf16.mxu1 %v619_v2  ;;  %v624_v7 = vld [vmem:[%s1046_s1 + $0x18] sm:$0xff]   ;;  %v626_v9 = vld [vmem:[%s1046_s1 + $0x20] sm:$0xff]   ;;  %v16_v11 = vld [vmem:[%s1047_s0 + $0x8] sm:$0xff] }
   0x5   :  { %v18_v12 = vld [vmem:[%s1047_s0 + $0x18] sm:$0xff]  ;;  %v48_v13 = vld [vmem:[%s1047_s0 + $0x108] sm:$0xff]  ;;  %v629_v18 = vld [vmem:[%s1046_s1 + $0x70] sm:$0xff]  }
   0x6   :  { %v78_v14 = vpack.c.bf16 %v18_v12, %v16_v11  ;;  %v50_v15 = vld [vmem:[%s1047_s0 + $0x118] sm:$0xff]  ;;  %v628_v17 = vld [vmem:[%s1046_s1 + $0x28] sm:$0xff]   ;;  %v630_v19 = vld [vmem:[%s1046_s1 + $0x30] sm:$0xff]  }
   0x7   :  { %492 = vmatpush3.bf16.msra.mxu0 %v620_v3  ;;  %610 = vmatpush3.bf16.msra.mxu1 %v620_v3  ;;  %v94_v16 = vpack.c.bf16 %v50_v15, %v48_v13  ;;  %v631_v20 = vld [vmem:[%s1046_s1 + $0x78] sm:$0xff]   ;;  %v15_v22 = vld [vmem:[%s1047_s0] sm:$0xff]  ;;  %v17_v23 = vld [vmem:[%s1047_s0 + $0x10] sm:$0xff] }
   0x8   :  { %493 = vmatprep.subr.bf16.mxu0 %v621_v4  ;;  %603 = vmatprep.subr.bf16.mxu1 %v621_v4  ;;  %v632_v21 = vld [vmem:[%s1046_s1 + $0x38] sm:$0xff]   ;;  %v47_v24 = vld [vmem:[%s1047_s0 + $0x100] sm:$0xff]  ;;  %v49_v25 = vld [vmem:[%s1047_s0 + $0x110] sm:$0xff]  ;;  %v77_v30 = vpack.c.bf16 %v17_v23, %v15_v22 }
   0x9   :  { %276 = vmatprep.mubr.bf16.mxu0 %v78_v14  ;;  %340 = vmatprep.mubr.bf16.mxu1 %v94_v16  ;;  %v20_v26 = vld [vmem:[%s1047_s0 + $0x28] sm:$0xff]  ;;  %v22_v27 = vld [vmem:[%s1047_s0 + $0x38] sm:$0xff]  ;;  %v93_v31 = vpack.c.bf16 %v49_v25, %v47_v24  ;;  %v19_v34 = vld [vmem:[%s1047_s0 + $0x20] sm:$0xff] }
   0xa   :  { %v52_v28 = vld [vmem:[%s1047_s0 + $0x128] sm:$0xff]  ;;  %v54_v29 = vld [vmem:[%s1047_s0 + $0x138] sm:$0xff]  ;;  %v80_v32 = vpack.c.bf16 %v22_v27, %v20_v26  ;;  %v21_v35 = vld [vmem:[%s1047_s0 + $0x30] sm:$0xff] }
   0xb   :  { %494 = vmatpush3.bf16.msra.mxu0 %v622_v5  ;;  %611 = vmatpush3.bf16.msra.mxu1 %v622_v5  ;;  %v96_v33 = vpack.c.bf16 %v54_v29, %v52_v28  ;;  %v51_v36 = vld [vmem:[%s1047_s0 + $0x120] sm:$0xff]  ;;  %v53_v37 = vld [vmem:[%s1047_s0 + $0x130] sm:$0xff]  ;;  %v24_v38 = vld [vmem:[%s1047_s0 + $0x48] sm:$0xff]  ;;  %v79_v42 = vpack.c.bf16 %v21_v35, %v19_v34 }
   0xc   :  { %495 = vmatprep.subr.bf16.mxu0 %v623_v6  ;;  %604 = vmatprep.subr.bf16.mxu1 %v623_v6  ;;  %v26_v39 = vld [vmem:[%s1047_s0 + $0x58] sm:$0xff]  ;;  %v56_v40 = vld [vmem:[%s1047_s0 + $0x148] sm:$0xff]  ;;  %v95_v43 = vpack.c.bf16 %v53_v37, %v51_v36  ;;  %v23_v46 = vld [vmem:[%s1047_s0 + $0x40] sm:$0xff] }
   0xd   :  { %v58_v41 = vld [vmem:[%s1047_s0 + $0x158] sm:$0xff]  ;;  %v82_v44 = vpack.c.bf16 %v26_v39, %v24_v38  ;;  %v25_v47 = vld [vmem:[%s1047_s0 + $0x50] sm:$0xff]  ;;  %v55_v48 = vld [vmem:[%s1047_s0 + $0x140] sm:$0xff] }
   0xe   :  { %v98_v45 = vpack.c.bf16 %v58_v41, %v56_v40  ;;  %v57_v49 = vld [vmem:[%s1047_s0 + $0x150] sm:$0xff]  ;;  %v28_v50 = vld [vmem:[%s1047_s0 + $0x68] sm:$0xff]  ;;  %v30_v51 = vld [vmem:[%s1047_s0 + $0x78] sm:$0xff]  ;;  %v81_v54 = vpack.c.bf16 %v25_v47, %v23_v46 }
   0xf   :  { %496 = vmatpush3.bf16.msra.mxu0 %v624_v7  ;;  %612 = vmatpush3.bf16.msra.mxu1 %v624_v7  ;;  %v60_v52 = vld [vmem:[%s1047_s0 + $0x168] sm:$0xff]  ;;  %v62_v53 = vld [vmem:[%s1047_s0 + $0x178] sm:$0xff]  ;;  %v97_v55 = vpack.c.bf16 %v57_v49, %v55_v48  ;;  %v84_v56 = vpack.c.bf16 %v30_v51, %v28_v50  ;;  %v27_v58 = vld [vmem:[%s1047_s0 + $0x60] sm:$0xff] }
  0x10   :  { %497 = vmatprep.subr.bf16.mxu0 %v625_v8  ;;  %605 = vmatprep.subr.bf16.mxu1 %v625_v8  ;;  %v100_v57 = vpack.c.bf16 %v62_v53, %v60_v52  ;;  %v29_v59 = vld [vmem:[%s1047_s0 + $0x70] sm:$0xff]  ;;  %v59_v60 = vld [vmem:[%s1047_s0 + $0x160] sm:$0xff]  ;;  %v32_v62 = vld [vmem:[%s1047_s0 + $0x88] sm:$0xff] }
  0x11   :  { %v61_v61 = vld [vmem:[%s1047_s0 + $0x170] sm:$0xff]  ;;  %v34_v63 = vld [vmem:[%s1047_s0 + $0x98] sm:$0xff]  ;;  %v64_v0 = vld [vmem:[%s1047_s0 + $0x188] sm:$0xff]  ;;  %v83_v2 = vpack.c.bf16 %v29_v59, %v27_v58 }
  0x12   :  { %v66_v1 = vld [vmem:[%s1047_s0 + $0x198] sm:$0xff]  ;;  %v99_v3 = vpack.c.bf16 %v61_v61, %v59_v60  ;;  %v86_v4 = vpack.c.bf16 %v34_v63, %v32_v62  ;;  %v31_v6 = vld [vmem:[%s1047_s0 + $0x80] sm:$0xff]  ;;  %v33_v7 = vld [vmem:[%s1047_s0 + $0x90] sm:$0xff] }
  0x13   :  { %498 = vmatpush3.bf16.msra.mxu0 %v626_v9  ;;  %613 = vmatpush3.bf16.msra.mxu1 %v626_v9  ;;  %v102_v5 = vpack.c.bf16 %v66_v1, %v64_v0  ;;  %v63_v8 = vld [vmem:[%s1047_s0 + $0x180] sm:$0xff]  ;;  %v65_v9 = vld [vmem:[%s1047_s0 + $0x190] sm:$0xff]  ;;  %v38_v11 = vld [vmem:[%s1047_s0 + $0xb8] sm:$0xff]  ;;  %v85_v14 = vpack.c.bf16 %v33_v7, %v31_v6 }
  0x14   :  { %499 = vmatprep.subr.bf16.mxu0 %v627_v10  ;;  %606 = vmatprep.subr.bf16.mxu1 %v627_v10  ;;  %v36_v10 = vld [vmem:[%s1047_s0 + $0xa8] sm:$0xff]  ;;  %v70_v13 = vld [vmem:[%s1047_s0 + $0x1b8] sm:$0xff]  ;;  %v101_v15 = vpack.c.bf16 %v65_v9, %v63_v8  ;;  %v43_v41 = vld [vmem:[%s1047_s0 + $0xe0] sm:$0xff] }
  0x15   :  { %v68_v12 = vld [vmem:[%s1047_s0 + $0x1a8] sm:$0xff]  ;;  %v88_v16 = vpack.c.bf16 %v38_v11, %v36_v10  ;;  %v42_v23 = vld [vmem:[%s1047_s0 + $0xd8] sm:$0xff]  ;;  %v890_v48 = vld [vmem:[%s1048_s2] ss:$0 sm:$0xff] }
  0x16   :  { %v40_v22 = vld [vmem:[%s1047_s0 + $0xc8] sm:$0xff]  ;;  %v74_v25 = vld [vmem:[%s1047_s0 + $0x1d8] sm:$0xff] }
  0x17   :  { %500 = vmatpush3.bf16.msra.mxu0 %v628_v17  ;;  %614 = vmatpush3.bf16.msra.mxu1 %v628_v17  ;;  %v104_v17 = vpack.c.bf16 %v70_v13, %v68_v12  ;;  %v72_v24 = vld [vmem:[%s1047_s0 + $0x1c8] sm:$0xff]  ;;  %v90_v28 = vpack.c.bf16 %v42_v23, %v40_v22  ;;  %v46_v35 = vld [vmem:[%s1047_s0 + $0xf8] sm:$0xff] }
  0x18   :  { %501 = vmatprep.subr.bf16.mxu0 %v629_v18  ;;  %607 = vmatprep.subr.bf16.mxu1 %v629_v18  ;;  %v35_v18 = vld [vmem:[%s1047_s0 + $0xa0] sm:$0xff]  ;;  %v106_v29 = vpack.c.bf16 %v74_v25, %v72_v24  ;;  %v44_v34 = vld [vmem:[%s1047_s0 + $0xe8] sm:$0xff] }
  0x19   :  { %v76_v36 = vld [vmem:[%s1047_s0 + $0x1e8] sm:$0x3]  ;;  %v92_v39 = vpack.c.bf16 %v46_v35, %v44_v34 }
  0x1a   :  { %v108_v40 = vpack.c.bf16 %v76_v36, %v76_v36 }
  0x1b   :  { %502 = vmatpush3.bf16.msra.mxu0 %v630_v19  ;;  %615 = vmatpush3.bf16.msra.mxu1 %v630_v19  ;;  %v37_v19 = vld [vmem:[%s1047_s0 + $0xb0] sm:$0xff] }
  0x1c   :  { %503 = vmatprep.subr.bf16.mxu0 %v631_v20  ;;  %608 = vmatprep.subr.bf16.mxu1 %v631_v20  ;;  %v67_v20 = vld [vmem:[%s1047_s0 + $0x1a0] sm:$0xff]  ;;  %v87_v26 = vpack.c.bf16 %v37_v19, %v35_v18 }
  0x1f   :  { %504 = vmatpush3.bf16.msra.mxu0 %v632_v21  ;;  %616 = vmatpush3.bf16.msra.mxu1 %v632_v21  ;;  %v69_v21 = vld [vmem:[%s1047_s0 + $0x1b0] sm:$0xff] }
  0x20   :  { %v103_v27 = vpack.c.bf16 %v69_v21, %v67_v20 }
  0x22   :  { %277 = vmatmul.mubr.bf16.vlgmr.msra.gmra.mrb[0].mxu0 %v77_v30  ;;  %341 = vmatmul.mubr.bf16.vlgmr.msra.gmra.mrb[0].mxu1 %v93_v31  ;;  %v39_v30 = vld [vmem:[%s1047_s0 + $0xc0] sm:$0xff]  ;;  %v41_v31 = vld [vmem:[%s1047_s0 + $0xd0] sm:$0xff] }
  0x23   :  { %284 = vmatprep.mubr.bf16.mxu0 %v80_v32  ;;  %348 = vmatprep.mubr.bf16.mxu1 %v96_v33  ;;  %v71_v32 = vld [vmem:[%s1047_s0 + $0x1c0] sm:$0xff]  ;;  %v73_v33 = vld [vmem:[%s1047_s0 + $0x1d0] sm:$0xff]  ;;  %v89_v37 = vpack.c.bf16 %v41_v31, %v39_v30 }
  0x24   :  { %v105_v38 = vpack.c.bf16 %v73_v33, %v71_v32 }
  0x2a   :  { %285 = vmatmul.mubr.bf16.gmra.mrb[4].mxu0 %v79_v42  ;;  %349 = vmatmul.mubr.bf16.gmra.mrb[4].mxu1 %v95_v43  ;;  %v45_v42 = vld [vmem:[%s1047_s0 + $0xf0] sm:$0xff]  ;;  %v75_v43 = vld [vmem:[%s1047_s0 + $0x1e0] sm:$0x3] }
  0x2b   :  { %292 = vmatprep.mubr.bf16.mxu0 %v82_v44  ;;  %356 = vmatprep.mubr.bf16.mxu1 %v98_v45  ;;  %v91_v44 = vpack.c.bf16 %v45_v42, %v43_v41  ;;  %v107_v45 = vpack.c.bf16 %v75_v43, %v75_v43 }
  0x32   :  { %293 = vmatmul.mubr.bf16.gmra.mrb[8].mxu0 %v81_v54  ;;  %357 = vmatmul.mubr.bf16.gmra.mrb[8].mxu1 %v97_v55 }
  0x33   :  { %300 = vmatprep.mubr.bf16.mxu0 %v84_v56  ;;  %364 = vmatprep.mubr.bf16.mxu1 %v100_v57 }
  0x3a   :  { %301 = vmatmul.mubr.bf16.gmra.mrb[12].mxu0 %v83_v2  ;;  %365 = vmatmul.mubr.bf16.gmra.mrb[12].mxu1 %v99_v3 }
  0x3b   :  { %308 = vmatprep.mubr.bf16.mxu0 %v86_v4  ;;  %372 = vmatprep.mubr.bf16.mxu1 %v102_v5 }
  0x42   :  { %309 = vmatmul.mubr.bf16.gmra.mrb[16].mxu0 %v85_v14  ;;  %373 = vmatmul.mubr.bf16.gmra.mrb[16].mxu1 %v101_v15 }
  0x43   :  { %316 = vmatprep.mubr.bf16.mxu0 %v88_v16  ;;  %380 = vmatprep.mubr.bf16.mxu1 %v104_v17 }
  0x4a   :  { %317 = vmatmul.mubr.bf16.gmra.mrb[20].mxu0 %v87_v26  ;;  %381 = vmatmul.mubr.bf16.gmra.mrb[20].mxu1 %v103_v27 }
  0x4b   :  { %324 = vmatprep.mubr.bf16.mxu0 %v90_v28  ;;  %388 = vmatprep.mubr.bf16.mxu1 %v106_v29 }
  0x52   :  { %325 = vmatmul.mubr.bf16.gmra.mrb[24].mxu0 %v89_v37  ;;  %389 = vmatmul.mubr.bf16.gmra.mrb[24].mxu1 %v105_v38 }
  0x53   :  { %332 = vmatprep.mubr.bf16.mxu0 %v92_v39  ;;  %396 = vmatprep.mubr.bf16.mxu1 %v108_v40 }
  0x5a   :  { %333 = vmatmul.mubr.bf16.gmra.mrb[28].mxu0 %v91_v44  ;;  %397 = vmatmul.mubr.bf16.gmra.mrb[28].mxu1 %v107_v45 }
  0xf5   :  { %v505_v46 = vpop.f32.mrb[0].mxu0  ;;  %v553_v47 = vpop.f32.mrb[0].mxu1 }
  0xf6   :  { %v506_v49 = vpop.f32.mrb[1].mxu0  ;;  %v554_v50 = vpop.f32.mrb[1].mxu1 }
  0xf7   :  { %v507_v51 = vadd.f32 %v506_v49, %v505_v46  ;;  %v555_v52 = vadd.f32 %v554_v50, %v553_v47  ;;  %v508_v53 = vpop.f32.mrb[2].mxu0  ;;  %v556_v54 = vpop.f32.mrb[2].mxu1 }
  0xf8   :  { %v509_v55 = vpop.f32.mrb[3].mxu0  ;;  %v557_v56 = vpop.f32.mrb[3].mxu1 }
  0xf9   :  { %v279_v57 = vadd.f32 %v507_v51, %v890_v48  ;;  %v343_v58 = vadd.f32 %v555_v52, %v890_v48  ;;  %v510_v59 = vadd.f32 %v509_v55, %v508_v53  ;;  %v558_v60 = vadd.f32 %v557_v56, %v556_v54 }
  0xfb   :  { %v404_v61 = vmax.f32 %v279_v57, 0.0  ;;  %v420_v62 = vmax.f32 %v343_v58, 0.0  ;;  %v282_v63 = vadd.f32 %v510_v59, %v890_v48  ;;  %v346_v0 = vadd.f32 %v558_v60, %v890_v48 }
  0xfd   :  { %436 = vst.msk [vmem:[%s1049_s3] sm:$0xff] %vm435_vm0, %v404_v61  ;;  %452 = vst.msk [vmem:[%s1049_s3 + $0x80] sm:$0xff] %vm435_vm0, %v420_v62  ;;  %v405_v1 = vmax.f32 %v282_v63, 0.0  ;;  %v421_v2 = vmax.f32 %v346_v0, 0.0  ;;  %v511_v3 = vpop.f32.mrb[4].mxu0  ;;  %v559_v4 = vpop.f32.mrb[4].mxu1 }
  0xfe   :  { %v512_v5 = vpop.f32.mrb[5].mxu0  ;;  %v560_v6 = vpop.f32.mrb[5].mxu1 }
  0xff   :  { %437 = vst.msk [vmem:[%s1049_s3 + $0x8] sm:$0xff] %vm435_vm0, %v405_v1  ;;  %453 = vst.msk [vmem:[%s1049_s3 + $0x88] sm:$0xff] %vm435_vm0, %v421_v2  ;;  %v513_v7 = vadd.f32 %v512_v5, %v511_v3  ;;  %v561_v8 = vadd.f32 %v560_v6, %v559_v4  ;;  %v514_v9 = vpop.f32.mrb[6].mxu0  ;;  %v562_v10 = vpop.f32.mrb[6].mxu1 }
 0x100   :  { %v515_v11 = vpop.f32.mrb[7].mxu0  ;;  %v563_v12 = vpop.f32.mrb[7].mxu1 }
 0x101   :  { %v287_v13 = vadd.f32 %v513_v7, %v890_v48  ;;  %v351_v14 = vadd.f32 %v561_v8, %v890_v48  ;;  %v516_v15 = vadd.f32 %v515_v11, %v514_v9  ;;  %v564_v16 = vadd.f32 %v563_v12, %v562_v10 }
 0x103   :  { %v406_v17 = vmax.f32 %v287_v13, 0.0  ;;  %v422_v18 = vmax.f32 %v351_v14, 0.0  ;;  %v290_v19 = vadd.f32 %v516_v15, %v890_v48  ;;  %v354_v20 = vadd.f32 %v564_v16, %v890_v48 }
 0x105   :  { %438 = vst.msk [vmem:[%s1049_s3 + $0x10] sm:$0xff] %vm435_vm0, %v406_v17  ;;  %454 = vst.msk [vmem:[%s1049_s3 + $0x90] sm:$0xff] %vm435_vm0, %v422_v18  ;;  %v407_v21 = vmax.f32 %v290_v19, 0.0  ;;  %v423_v22 = vmax.f32 %v354_v20, 0.0  ;;  %v517_v23 = vpop.f32.mrb[8].mxu0  ;;  %v565_v24 = vpop.f32.mrb[8].mxu1 }
 0x106   :  { %v518_v25 = vpop.f32.mrb[9].mxu0  ;;  %v566_v26 = vpop.f32.mrb[9].mxu1 }
 0x107   :  { %439 = vst.msk [vmem:[%s1049_s3 + $0x18] sm:$0xff] %vm435_vm0, %v407_v21  ;;  %455 = vst.msk [vmem:[%s1049_s3 + $0x98] sm:$0xff] %vm435_vm0, %v423_v22  ;;  %v519_v27 = vadd.f32 %v518_v25, %v517_v23  ;;  %v567_v28 = vadd.f32 %v566_v26, %v565_v24  ;;  %v520_v29 = vpop.f32.mrb[10].mxu0  ;;  %v568_v30 = vpop.f32.mrb[10].mxu1 }
 0x108   :  { %v521_v31 = vpop.f32.mrb[11].mxu0  ;;  %v569_v32 = vpop.f32.mrb[11].mxu1 }
 0x109   :  { %v295_v33 = vadd.f32 %v519_v27, %v890_v48  ;;  %v359_v34 = vadd.f32 %v567_v28, %v890_v48  ;;  %v522_v35 = vadd.f32 %v521_v31, %v520_v29  ;;  %v570_v36 = vadd.f32 %v569_v32, %v568_v30 }
 0x10b   :  { %v408_v37 = vmax.f32 %v295_v33, 0.0  ;;  %v424_v38 = vmax.f32 %v359_v34, 0.0  ;;  %v298_v39 = vadd.f32 %v522_v35, %v890_v48  ;;  %v362_v40 = vadd.f32 %v570_v36, %v890_v48 }
 0x10d   :  { %440 = vst.msk [vmem:[%s1049_s3 + $0x20] sm:$0xff] %vm435_vm0, %v408_v37  ;;  %456 = vst.msk [vmem:[%s1049_s3 + $0xa0] sm:$0xff] %vm435_vm0, %v424_v38  ;;  %v409_v41 = vmax.f32 %v298_v39, 0.0  ;;  %v425_v42 = vmax.f32 %v362_v40, 0.0  ;;  %v523_v43 = vpop.f32.mrb[12].mxu0  ;;  %v571_v44 = vpop.f32.mrb[12].mxu1 }
 0x10e   :  { %v524_v45 = vpop.f32.mrb[13].mxu0  ;;  %v572_v46 = vpop.f32.mrb[13].mxu1 }
 0x10f   :  { %441 = vst.msk [vmem:[%s1049_s3 + $0x28] sm:$0xff] %vm435_vm0, %v409_v41  ;;  %457 = vst.msk [vmem:[%s1049_s3 + $0xa8] sm:$0xff] %vm435_vm0, %v425_v42  ;;  %v525_v47 = vadd.f32 %v524_v45, %v523_v43  ;;  %v573_v49 = vadd.f32 %v572_v46, %v571_v44  ;;  %v526_v50 = vpop.f32.mrb[14].mxu0  ;;  %v574_v51 = vpop.f32.mrb[14].mxu1 }
 0x110   :  { %v527_v52 = vpop.f32.mrb[15].mxu0  ;;  %v575_v53 = vpop.f32.mrb[15].mxu1 }
 0x111   :  { %v303_v54 = vadd.f32 %v525_v47, %v890_v48  ;;  %v367_v55 = vadd.f32 %v573_v49, %v890_v48  ;;  %v528_v56 = vadd.f32 %v527_v52, %v526_v50  ;;  %v576_v57 = vadd.f32 %v575_v53, %v574_v51 }
 0x113   :  { %v410_v58 = vmax.f32 %v303_v54, 0.0  ;;  %v426_v59 = vmax.f32 %v367_v55, 0.0  ;;  %v306_v60 = vadd.f32 %v528_v56, %v890_v48  ;;  %v370_v61 = vadd.f32 %v576_v57, %v890_v48 }
 0x115   :  { %442 = vst.msk [vmem:[%s1049_s3 + $0x30] sm:$0xff] %vm435_vm0, %v410_v58  ;;  %458 = vst.msk [vmem:[%s1049_s3 + $0xb0] sm:$0xff] %vm435_vm0, %v426_v59  ;;  %v411_v62 = vmax.f32 %v306_v60, 0.0  ;;  %v427_v63 = vmax.f32 %v370_v61, 0.0  ;;  %v529_v0 = vpop.f32.mrb[16].mxu0  ;;  %v577_v1 = vpop.f32.mrb[16].mxu1 }
 0x116   :  { %v530_v2 = vpop.f32.mrb[17].mxu0  ;;  %v578_v3 = vpop.f32.mrb[17].mxu1 }
 0x117   :  { %443 = vst.msk [vmem:[%s1049_s3 + $0x38] sm:$0xff] %vm435_vm0, %v411_v62  ;;  %459 = vst.msk [vmem:[%s1049_s3 + $0xb8] sm:$0xff] %vm435_vm0, %v427_v63  ;;  %v531_v4 = vadd.f32 %v530_v2, %v529_v0  ;;  %v579_v5 = vadd.f32 %v578_v3, %v577_v1  ;;  %v532_v6 = vpop.f32.mrb[18].mxu0  ;;  %v580_v7 = vpop.f32.mrb[18].mxu1 }
 0x118   :  { %v533_v8 = vpop.f32.mrb[19].mxu0  ;;  %v581_v9 = vpop.f32.mrb[19].mxu1 }
 0x119   :  { %v311_v10 = vadd.f32 %v531_v4, %v890_v48  ;;  %v375_v11 = vadd.f32 %v579_v5, %v890_v48  ;;  %v534_v12 = vadd.f32 %v533_v8, %v532_v6  ;;  %v582_v13 = vadd.f32 %v581_v9, %v580_v7 }
 0x11b   :  { %v412_v14 = vmax.f32 %v311_v10, 0.0  ;;  %v428_v15 = vmax.f32 %v375_v11, 0.0  ;;  %v314_v16 = vadd.f32 %v534_v12, %v890_v48  ;;  %v378_v17 = vadd.f32 %v582_v13, %v890_v48 }
 0x11d   :  { %444 = vst.msk [vmem:[%s1049_s3 + $0x40] sm:$0xff] %vm435_vm0, %v412_v14  ;;  %460 = vst.msk [vmem:[%s1049_s3 + $0xc0] sm:$0xff] %vm435_vm0, %v428_v15  ;;  %v413_v18 = vmax.f32 %v314_v16, 0.0  ;;  %v429_v19 = vmax.f32 %v378_v17, 0.0  ;;  %v535_v20 = vpop.f32.mrb[20].mxu0  ;;  %v583_v21 = vpop.f32.mrb[20].mxu1 }
 0x11e   :  { %v536_v22 = vpop.f32.mrb[21].mxu0  ;;  %v584_v23 = vpop.f32.mrb[21].mxu1 }
 0x11f   :  { %445 = vst.msk [vmem:[%s1049_s3 + $0x48] sm:$0xff] %vm435_vm0, %v413_v18  ;;  %461 = vst.msk [vmem:[%s1049_s3 + $0xc8] sm:$0xff] %vm435_vm0, %v429_v19  ;;  %v537_v24 = vadd.f32 %v536_v22, %v535_v20  ;;  %v585_v25 = vadd.f32 %v584_v23, %v583_v21  ;;  %v538_v26 = vpop.f32.mrb[22].mxu0  ;;  %v586_v27 = vpop.f32.mrb[22].mxu1 }
 0x120   :  { %v539_v28 = vpop.f32.mrb[23].mxu0  ;;  %v587_v29 = vpop.f32.mrb[23].mxu1 }
 0x121   :  { %v319_v30 = vadd.f32 %v537_v24, %v890_v48  ;;  %v383_v31 = vadd.f32 %v585_v25, %v890_v48  ;;  %v540_v32 = vadd.f32 %v539_v28, %v538_v26  ;;  %v588_v33 = vadd.f32 %v587_v29, %v586_v27 }
 0x123   :  { %v414_v34 = vmax.f32 %v319_v30, 0.0  ;;  %v430_v35 = vmax.f32 %v383_v31, 0.0  ;;  %v322_v36 = vadd.f32 %v540_v32, %v890_v48  ;;  %v386_v37 = vadd.f32 %v588_v33, %v890_v48 }
 0x125   :  { %446 = vst.msk [vmem:[%s1049_s3 + $0x50] sm:$0xff] %vm435_vm0, %v414_v34  ;;  %462 = vst.msk [vmem:[%s1049_s3 + $0xd0] sm:$0xff] %vm435_vm0, %v430_v35  ;;  %v415_v38 = vmax.f32 %v322_v36, 0.0  ;;  %v431_v39 = vmax.f32 %v386_v37, 0.0  ;;  %v541_v40 = vpop.f32.mrb[24].mxu0  ;;  %v589_v41 = vpop.f32.mrb[24].mxu1 }
 0x126   :  { %v542_v42 = vpop.f32.mrb[25].mxu0  ;;  %v590_v43 = vpop.f32.mrb[25].mxu1 }
 0x127   :  { %447 = vst.msk [vmem:[%s1049_s3 + $0x58] sm:$0xff] %vm435_vm0, %v415_v38  ;;  %463 = vst.msk [vmem:[%s1049_s3 + $0xd8] sm:$0xff] %vm435_vm0, %v431_v39  ;;  %v543_v44 = vadd.f32 %v542_v42, %v541_v40  ;;  %v591_v45 = vadd.f32 %v590_v43, %v589_v41  ;;  %v544_v46 = vpop.f32.mrb[26].mxu0  ;;  %v592_v47 = vpop.f32.mrb[26].mxu1 }
 0x128   :  { %v545_v49 = vpop.f32.mrb[27].mxu0  ;;  %v593_v50 = vpop.f32.mrb[27].mxu1 }
 0x129   :  { %v327_v51 = vadd.f32 %v543_v44, %v890_v48  ;;  %v391_v52 = vadd.f32 %v591_v45, %v890_v48  ;;  %v546_v53 = vadd.f32 %v545_v49, %v544_v46  ;;  %v594_v54 = vadd.f32 %v593_v50, %v592_v47 }
 0x12b   :  { %v416_v55 = vmax.f32 %v327_v51, 0.0  ;;  %v432_v56 = vmax.f32 %v391_v52, 0.0  ;;  %v330_v57 = vadd.f32 %v546_v53, %v890_v48  ;;  %v394_v58 = vadd.f32 %v594_v54, %v890_v48 }
 0x12d   :  { %448 = vst.msk [vmem:[%s1049_s3 + $0x60] sm:$0xff] %vm435_vm0, %v416_v55  ;;  %464 = vst.msk [vmem:[%s1049_s3 + $0xe0] sm:$0xff] %vm435_vm0, %v432_v56  ;;  %v417_v59 = vmax.f32 %v330_v57, 0.0  ;;  %v433_v60 = vmax.f32 %v394_v58, 0.0  ;;  %v547_v61 = vpop.f32.mrb[28].mxu0  ;;  %v595_v62 = vpop.f32.mrb[28].mxu1 }
 0x12e   :  { %v548_v63 = vpop.f32.mrb[29].mxu0  ;;  %v596_v0 = vpop.f32.mrb[29].mxu1 }
 0x12f   :  { %449 = vst.msk [vmem:[%s1049_s3 + $0x68] sm:$0xff] %vm435_vm0, %v417_v59  ;;  %465 = vst.msk [vmem:[%s1049_s3 + $0xe8] sm:$0xff] %vm435_vm0, %v433_v60  ;;  %v549_v1 = vadd.f32 %v548_v63, %v547_v61  ;;  %v597_v2 = vadd.f32 %v596_v0, %v595_v62  ;;  %v550_v3 = vpop.f32.mrb[30].mxu0  ;;  %v598_v4 = vpop.f32.mrb[30].mxu1 }
 0x130   :  { %v551_v5 = vpop.f32.mrb[31].mxu0  ;;  %v599_v6 = vpop.f32.mrb[31].mxu1 }
 0x131   :  { %v335_v7 = vadd.f32 %v549_v1, %v890_v48  ;;  %v399_v8 = vadd.f32 %v597_v2, %v890_v48  ;;  %v552_v9 = vadd.f32 %v551_v5, %v550_v3 }
 0x133   :  { %v418_v10 = vmax.f32 %v335_v7, 0.0  ;;  %v434_v11 = vmax.f32 %v399_v8, 0.0  ;;  %v338_v12 = vadd.f32 %v552_v9, %v890_v48 }
 0x135   :  { %450 = vst.msk [vmem:[%s1049_s3 + $0x70] sm:$0xff] %vm435_vm0, %v418_v10  ;;  %v419_v13 = vmax.f32 %v338_v12, 0.0 }
 0x136   :  { %467 = vst.msk [vmem:[%s1049_s3 + $0xf0] sm:$0x3] %vm466_vm1, %v434_v11 }
 0x137   :  { %451 = vst.msk [vmem:[%s1049_s3 + $0x78] sm:$0xff] %vm435_vm0, %v419_v13 }

// kernel: ddaqn_forward.6
= control target key start
LH: loop header
LB: loop body
LE: loop exit
PB: predicated region body
PF: predicated region fallthrough
CT: control target
= control target key end

     0   :  { %vm404_vm0 = vcmask 523264   ;;  %s717_s1 = inlined_call_operand.vmem [shape: bf16[512,64], index: 1, kind: input, shape index: {}]   ;;  %s718_s0 = inlined_call_operand.vmem [shape: f32[32,512], index: 0, kind: input, shape index: {}]   ;;  %s719_s2 = inlined_call_operand.vmem [shape: f32[1,64], index: 2, kind: input, shape index: {}]   ;;  %s720_s3 = inlined_call_operand.vmem [shape: f32[32,64], index: 3, kind: output, shape index: {}]  }
   0x1   :  { %v502_v0 = vld [vmem:[%s717_s1 + $0x40] sm:$0xff]   ;;  %v506_v4 = vld [vmem:[%s717_s1 + $0x48] sm:$0xff]   ;;  %v510_v8 = vld [vmem:[%s717_s1 + $0x50] sm:$0xff]  }
   0x2   :  { %v503_v1 = vld [vmem:[%s717_s1 + $0xc0] sm:$0xff]   ;;  %446 = vmatprep.subr.bf16.mxu0 %v502_v0  ;;  %v507_v5 = vld [vmem:[%s717_s1 + $0xc8] sm:$0xff]   ;;  %v511_v9 = vld [vmem:[%s717_s1 + $0xd0] sm:$0xff]  }
   0x3   :  { %v504_v2 = vld [vmem:[%s717_s1] sm:$0xff]   ;;  %474 = vmatprep.subr.bf16.mxu1 %v503_v1  ;;  %v508_v6 = vld [vmem:[%s717_s1 + $0x8] sm:$0xff]   ;;  %v512_v10 = vld [vmem:[%s717_s1 + $0x10] sm:$0xff]  }
   0x4   :  { %v505_v3 = vld [vmem:[%s717_s1 + $0x80] sm:$0xff]   ;;  %447 = vmatpush3.bf16.msra.mxu0 %v504_v2  ;;  %v509_v7 = vld [vmem:[%s717_s1 + $0x88] sm:$0xff]   ;;  %v513_v11 = vld [vmem:[%s717_s1 + $0x90] sm:$0xff]  }
   0x5   :  { %475 = vmatpush3.bf16.msra.mxu1 %v505_v3  ;;  %448 = vmatprep.subr.bf16.mxu0 %v506_v4  ;;  %v514_v12 = vld [vmem:[%s717_s1 + $0x58] sm:$0xff]   ;;  %v518_v16 = vld [vmem:[%s717_s1 + $0x60] sm:$0xff]   ;;  %v522_v20 = vld [vmem:[%s717_s1 + $0x68] sm:$0xff]  }
   0x6   :  { %476 = vmatprep.subr.bf16.mxu1 %v507_v5  ;;  %v515_v13 = vld [vmem:[%s717_s1 + $0xd8] sm:$0xff]   ;;  %v519_v17 = vld [vmem:[%s717_s1 + $0xe0] sm:$0xff]   ;;  %v523_v21 = vld [vmem:[%s717_s1 + $0xe8] sm:$0xff]  }
   0x7   :  { %v516_v14 = vld [vmem:[%s717_s1 + $0x18] sm:$0xff]   ;;  %v520_v18 = vld [vmem:[%s717_s1 + $0x20] sm:$0xff]   ;;  %v524_v22 = vld [vmem:[%s717_s1 + $0x28] sm:$0xff]  }
   0x8   :  { %449 = vmatpush3.bf16.msra.mxu0 %v508_v6  ;;  %v517_v15 = vld [vmem:[%s717_s1 + $0x98] sm:$0xff]   ;;  %v521_v19 = vld [vmem:[%s717_s1 + $0xa0] sm:$0xff]   ;;  %v525_v23 = vld [vmem:[%s717_s1 + $0xa8] sm:$0xff]  }
   0x9   :  { %477 = vmatpush3.bf16.msra.mxu1 %v509_v7  ;;  %450 = vmatprep.subr.bf16.mxu0 %v510_v8  ;;  %v526_v24 = vld [vmem:[%s717_s1 + $0x70] sm:$0xff]   ;;  %v530_v28 = vld [vmem:[%s717_s1 + $0x78] sm:$0xff]   ;;  %v16_v32 = vld [vmem:[%s718_s0 + $0x8] sm:$0xff] }
   0xa   :  { %478 = vmatprep.subr.bf16.mxu1 %v511_v9  ;;  %v527_v25 = vld [vmem:[%s717_s1 + $0xf0] sm:$0xff]   ;;  %v531_v29 = vld [vmem:[%s717_s1 + $0xf8] sm:$0xff]   ;;  %v20_v33 = vld [vmem:[%s718_s0 + $0x28] sm:$0xff] }
   0xb   :  { %v528_v26 = vld [vmem:[%s717_s1 + $0x30] sm:$0xff]   ;;  %v532_v30 = vld [vmem:[%s717_s1 + $0x38] sm:$0xff]   ;;  %v32_v35 = vpack.c.bf16 %v20_v33, %v16_v32  ;;  %v15_v37 = vld [vmem:[%s718_s0] sm:$0xff] }
   0xc   :  { %451 = vmatpush3.bf16.msra.mxu0 %v512_v10  ;;  %v529_v27 = vld [vmem:[%s717_s1 + $0xb0] sm:$0xff]   ;;  %v533_v31 = vld [vmem:[%s717_s1 + $0xb8] sm:$0xff]   ;;  %v19_v38 = vld [vmem:[%s718_s0 + $0x20] sm:$0xff] }
   0xd   :  { %479 = vmatpush3.bf16.msra.mxu1 %v513_v11  ;;  %452 = vmatprep.subr.bf16.mxu0 %v514_v12  ;;  %v18_v34 = vld [vmem:[%s718_s0 + $0x18] sm:$0xff]  ;;  %v31_v40 = vpack.c.bf16 %v19_v38, %v15_v37  ;;  %v17_v41 = vld [vmem:[%s718_s0 + $0x10] sm:$0xff]  ;;  %v24_v43 = vld [vmem:[%s718_s0 + $0x48] sm:$0xff] }
   0xe   :  { %480 = vmatprep.subr.bf16.mxu1 %v515_v13  ;;  %v22_v36 = vld [vmem:[%s718_s0 + $0x38] sm:$0xff]  ;;  %v21_v42 = vld [vmem:[%s718_s0 + $0x30] sm:$0xff]  ;;  %334 = vmatprep.mubr.bf16.mxu0 %v32_v35  ;;  %v28_v45 = vld [vmem:[%s718_s0 + $0x68] sm:$0xff] }
   0xf   :  { %v34_v39 = vpack.c.bf16 %v22_v36, %v18_v34  ;;  %v33_v44 = vpack.c.bf16 %v21_v42, %v17_v41  ;;  %v26_v46 = vld [vmem:[%s718_s0 + $0x58] sm:$0xff]  ;;  %v36_v48 = vpack.c.bf16 %v28_v45, %v24_v43  ;;  %v23_v50 = vld [vmem:[%s718_s0 + $0x40] sm:$0xff]  ;;  %v25_v52 = vld [vmem:[%s718_s0 + $0x50] sm:$0xff] }
  0x10   :  { %453 = vmatpush3.bf16.msra.mxu0 %v516_v14  ;;  %v30_v47 = vld [vmem:[%s718_s0 + $0x78] sm:$0xff]  ;;  %v27_v51 = vld [vmem:[%s718_s0 + $0x60] sm:$0xff]  ;;  %v29_v53 = vld [vmem:[%s718_s0 + $0x70] sm:$0xff] }
  0x11   :  { %481 = vmatpush3.bf16.msra.mxu1 %v517_v15  ;;  %454 = vmatprep.subr.bf16.mxu0 %v518_v16  ;;  %v38_v49 = vpack.c.bf16 %v30_v47, %v26_v46  ;;  %v35_v54 = vpack.c.bf16 %v27_v51, %v23_v50  ;;  %v37_v55 = vpack.c.bf16 %v29_v53, %v25_v52  ;;  %v413_v58 = vld [vmem:[%s719_s2] ss:$0 sm:$0xff] }
  0x12   :  { %482 = vmatprep.subr.bf16.mxu1 %v519_v17  ;;  %383 = vmatprep.mubr.bf16.mxu1 %v34_v39 }
  0x14   :  { %455 = vmatpush3.bf16.msra.mxu0 %v520_v18 }
  0x15   :  { %483 = vmatpush3.bf16.msra.mxu1 %v521_v19  ;;  %456 = vmatprep.subr.bf16.mxu0 %v522_v20 }
  0x16   :  { %484 = vmatprep.subr.bf16.mxu1 %v523_v21 }
  0x18   :  { %457 = vmatpush3.bf16.msra.mxu0 %v524_v22 }
  0x19   :  { %485 = vmatpush3.bf16.msra.mxu1 %v525_v23  ;;  %458 = vmatprep.subr.bf16.mxu0 %v526_v24 }
  0x1a   :  { %486 = vmatprep.subr.bf16.mxu1 %v527_v25 }
  0x1c   :  { %459 = vmatpush3.bf16.msra.mxu0 %v528_v26 }
  0x1d   :  { %487 = vmatpush3.bf16.msra.mxu1 %v529_v27  ;;  %460 = vmatprep.subr.bf16.mxu0 %v530_v28 }
  0x1e   :  { %488 = vmatprep.subr.bf16.mxu1 %v531_v29 }
  0x20   :  { %461 = vmatpush3.bf16.msra.mxu0 %v532_v30 }
  0x21   :  { %489 = vmatpush3.bf16.msra.mxu1 %v533_v31 }
  0x23   :  { %335 = vmatmul.mubr.bf16.vlgmr.msra.gmra.mrb[0].mxu0 %v31_v40 }
  0x24   :  { %384 = vmatmul.mubr.bf16.vlgmr.msra.gmra.mrb[0].mxu1 %v33_v44  ;;  %342 = vmatprep.mubr.bf16.mxu0 %v36_v48 }
  0x25   :  { %391 = vmatprep.mubr.bf16.mxu1 %v38_v49 }
  0x2b   :  { %343 = vmatmul.mubr.bf16.gmra.mrb[4].mxu0 %v35_v54 }
  0x2c   :  { %392 = vmatmul.mubr.bf16.gmra.mrb[4].mxu1 %v37_v55 }
  0xf6   :  { %v462_v56 = vpop.f32.mrb[0].mxu0 }
  0xf7   :  { %v490_v57 = vpop.f32.mrb[0].mxu1  ;;  %v463_v59 = vpop.f32.mrb[1].mxu0 }
  0xf8   :  { %v464_v60 = vadd.f32 %v463_v59, %v462_v56  ;;  %v491_v61 = vpop.f32.mrb[1].mxu1  ;;  %v465_v62 = vpop.f32.mrb[2].mxu0 }
  0xf9   :  { %v492_v63 = vadd.f32 %v491_v61, %v490_v57  ;;  %v493_v0 = vpop.f32.mrb[2].mxu1  ;;  %v466_v1 = vpop.f32.mrb[3].mxu0 }
  0xfa   :  { %v337_v2 = vadd.f32 %v464_v60, %v413_v58  ;;  %v467_v3 = vadd.f32 %v466_v1, %v465_v62  ;;  %v494_v4 = vpop.f32.mrb[3].mxu1 }
  0xfb   :  { %v495_v5 = vadd.f32 %v494_v4, %v493_v0 }
  0xfc   :  { %v386_v6 = vadd.f32 %v492_v63, %v337_v2  ;;  %v340_v7 = vadd.f32 %v467_v3, %v413_v58 }
  0xfe   :  { %v400_v8 = vmax.f32 %v386_v6, 0.0  ;;  %v389_v9 = vadd.f32 %v495_v5, %v340_v7  ;;  %v468_v10 = vpop.f32.mrb[4].mxu0 }
  0xff   :  { %v496_v11 = vpop.f32.mrb[4].mxu1  ;;  %v469_v12 = vpop.f32.mrb[5].mxu0 }
 0x100   :  { %405 = vst.msk [vmem:[%s720_s3] sm:$0xff] %vm404_vm0, %v400_v8  ;;  %v401_v13 = vmax.f32 %v389_v9, 0.0  ;;  %v470_v14 = vadd.f32 %v469_v12, %v468_v10  ;;  %v497_v15 = vpop.f32.mrb[5].mxu1  ;;  %v471_v16 = vpop.f32.mrb[6].mxu0 }
 0x101   :  { %v498_v17 = vadd.f32 %v497_v15, %v496_v11  ;;  %v499_v18 = vpop.f32.mrb[6].mxu1  ;;  %v472_v19 = vpop.f32.mrb[7].mxu0 }
 0x102   :  { %406 = vst.msk [vmem:[%s720_s3 + $0x8] sm:$0xff] %vm404_vm0, %v401_v13  ;;  %v345_v20 = vadd.f32 %v470_v14, %v413_v58  ;;  %v473_v21 = vadd.f32 %v472_v19, %v471_v16  ;;  %v500_v22 = vpop.f32.mrb[7].mxu1 }
 0x103   :  { %v501_v23 = vadd.f32 %v500_v22, %v499_v18 }
 0x104   :  { %v394_v24 = vadd.f32 %v498_v17, %v345_v20  ;;  %v348_v25 = vadd.f32 %v473_v21, %v413_v58 }
 0x106   :  { %v402_v26 = vmax.f32 %v394_v24, 0.0  ;;  %v397_v27 = vadd.f32 %v501_v23, %v348_v25 }
 0x108   :  { %407 = vst.msk [vmem:[%s720_s3 + $0x10] sm:$0xff] %vm404_vm0, %v402_v26  ;;  %v403_v28 = vmax.f32 %v397_v27, 0.0 }
 0x10a   :  { %408 = vst.msk [vmem:[%s720_s3 + $0x18] sm:$0xff] %vm404_vm0, %v403_v28 }

// kernel: ddaqn_forward.7
= control target key start
LH: loop header
LB: loop body
LE: loop exit
PB: predicated region body
PF: predicated region fallthrough
CT: control target
= control target key end

     0   :  { %v588_v35 = vmov 0.0   ;;  %vm589_vm0 = vmmov 0   ;;  %vm320_vm1 = vcmask 523264   ;;  %vm445_vm2 = vcmask 261120   ;;  %s739_s1 = inlined_call_operand.vmem [shape: bf16[576,32], index: 1, kind: input, shape index: {}]   ;;  %s740_s0 = inlined_call_operand.vmem [shape: f32[8,576], index: 0, kind: input, shape index: {}]   ;;  %s741_s2 = inlined_call_operand.vmem [shape: f32[1,32], index: 2, kind: input, shape index: {}]   ;;  %s742_s3 = inlined_call_operand.vmem [shape: f32[8,32], index: 3, kind: output, shape index: {}]  }
   0x1   :  { %v552_v0 = vld [vmem:[%s739_s1 + $0x40] sm:$0xff]   ;;  %v556_v4 = vld [vmem:[%s739_s1 + $0x48] sm:$0xff]   ;;  %v560_v8 = vld [vmem:[%s739_s1 + $0x50] sm:$0xff]  }
   0x2   :  { %v553_v1 = vld [vmem:[%s739_s1] sm:$0xff]   ;;  %489 = vmatprep.subr.bf16.mxu0 %v552_v0  ;;  %v557_v5 = vld [vmem:[%s739_s1 + $0x8] sm:$0xff]   ;;  %v561_v9 = vld [vmem:[%s739_s1 + $0x10] sm:$0xff]  }
   0x3   :  { %v554_v2 = vld [vmem:[%s739_s1 + $0xc0] sm:$0xff]   ;;  %490 = vmatpush3.bf16.msra.mxu0 %v553_v1  ;;  %v558_v6 = vld [vmem:[%s739_s1 + $0xc8] sm:$0xff]   ;;  %v562_v10 = vld [vmem:[%s739_s1 + $0xd0] sm:$0xff]  }
   0x4   :  { %v555_v3 = vld [vmem:[%s739_s1 + $0x80] sm:$0xff]   ;;  %511 = vmatprep.subr.bf16.mxu1 %v554_v2  ;;  %491 = vmatprep.subr.bf16.mxu0 %v556_v4  ;;  %v559_v7 = vld [vmem:[%s739_s1 + $0x88] sm:$0xff]   ;;  %v563_v11 = vld [vmem:[%s739_s1 + $0x90] sm:$0xff]  }
   0x5   :  { %512 = vmatpush3.bf16.msra.mxu1 %v555_v3  ;;  %v564_v12 = vld [vmem:[%s739_s1 + $0x58] sm:$0xff]   ;;  %v568_v16 = vld [vmem:[%s739_s1 + $0x60] sm:$0xff]   ;;  %v572_v20 = vld [vmem:[%s739_s1 + $0x68] sm:$0xff]  }
   0x6   :  { %513 = vmatprep.subr.bf16.mxu1 %v558_v6  ;;  %v565_v13 = vld [vmem:[%s739_s1 + $0x18] sm:$0xff]   ;;  %v569_v17 = vld [vmem:[%s739_s1 + $0x20] sm:$0xff]   ;;  %v573_v21 = vld [vmem:[%s739_s1 + $0x28] sm:$0xff]  }
   0x7   :  { %492 = vmatpush3.bf16.msra.mxu0 %v557_v5  ;;  %v566_v14 = vld [vmem:[%s739_s1 + $0xd8] sm:$0xff]   ;;  %v570_v18 = vld [vmem:[%s739_s1 + $0xe0] sm:$0xff]   ;;  %v574_v22 = vld [vmem:[%s739_s1 + $0xe8] sm:$0xff]  }
   0x8   :  { %493 = vmatprep.subr.bf16.mxu0 %v560_v8  ;;  %v567_v15 = vld [vmem:[%s739_s1 + $0x98] sm:$0xff]   ;;  %v571_v19 = vld [vmem:[%s739_s1 + $0xa0] sm:$0xff]   ;;  %v575_v23 = vld [vmem:[%s739_s1 + $0xa8] sm:$0xff]  }
   0x9   :  { %514 = vmatpush3.bf16.msra.mxu1 %v559_v7  ;;  %v576_v24 = vld [vmem:[%s739_s1 + $0x70] sm:$0xff]   ;;  %v580_v28 = vld [vmem:[%s739_s1 + $0x78] sm:$0xff]   ;;  %v16_v31 = vld [vmem:[%s740_s0 + $0x8] sm:$0xff] }
   0xa   :  { %515 = vmatprep.subr.bf16.mxu1 %v562_v10  ;;  %v577_v25 = vld [vmem:[%s739_s1 + $0x30] sm:$0xff]   ;;  %v581_v29 = vld [vmem:[%s739_s1 + $0x38] sm:$0xff]   ;;  %v21_v32 = vpack.c.bf16 %v16_v31, %v16_v31  ;;  %v15_v34 = vld [vmem:[%s740_s0] sm:$0xff] }
   0xb   :  { %494 = vmatpush3.bf16.msra.mxu0 %v561_v9  ;;  %v578_v26 = vld [vmem:[%s739_s1 + $0xf0] sm:$0xff]   ;;  %v582_v30 = vld [vmem:[%s739_s1 + $0xf8] sm:$0xff]   ;;  %v20_v37 = vpack.c.bf16 %v15_v34, %v15_v34  ;;  %v584_v39 = vld [vmem:[%s739_s1 + $0x100] sm:$0xff]  }
   0xc   :  { %495 = vmatprep.subr.bf16.mxu0 %v564_v12  ;;  %v579_v27 = vld [vmem:[%s739_s1 + $0xb0] sm:$0xff]   ;;  %v583_v33 = vld [vmem:[%s739_s1 + $0xb8] sm:$0xff]   ;;  %356 = vmatprep.mubr.bf16.mxu0 %v21_v32  ;;  %v585_v42 = vld [vmem:[%s739_s1 + $0x108] sm:$0xff]  }
   0xd   :  { %516 = vmatpush3.bf16.msra.mxu1 %v563_v11  ;;  %v18_v36 = vld [vmem:[%s740_s0 + $0x18] sm:$0xff]  ;;  %v17_v40 = vld [vmem:[%s740_s0 + $0x10] sm:$0xff]  ;;  %v19_v45 = vld [vmem:[%s740_s0 + $0x20] sm:$0xff] }
   0xe   :  { %517 = vmatprep.subr.bf16.mxu1 %v566_v14  ;;  %v23_v38 = vpack.c.bf16 %v18_v36, %v18_v36  ;;  %v22_v41 = vpack.c.bf16 %v17_v40, %v17_v40  ;;  %v586_v43 = vld [vmem:[%s739_s1 + $0x110] sm:$0xff]   ;;  %v587_v44 = vld [vmem:[%s739_s1 + $0x118] sm:$0xff]   ;;  %v24_v46 = vpack.c.bf16 %v19_v45, %v19_v45  ;;  %v451_v48 = vld [vmem:[%s741_s2] ss:$0 sm:$0xff] }
   0xf   :  { %496 = vmatpush3.bf16.msra.mxu0 %v565_v13 }
  0x10   :  { %497 = vmatprep.subr.bf16.mxu0 %v568_v16  ;;  %396 = vmatprep.mubr.bf16.mxu1 %v23_v38 }
  0x11   :  { %518 = vmatpush3.bf16.msra.mxu1 %v567_v15 }
  0x12   :  { %519 = vmatprep.subr.bf16.mxu1 %v570_v18 }
  0x13   :  { %498 = vmatpush3.bf16.msra.mxu0 %v569_v17 }
  0x14   :  { %499 = vmatprep.subr.bf16.mxu0 %v572_v20 }
  0x15   :  { %520 = vmatpush3.bf16.msra.mxu1 %v571_v19 }
  0x16   :  { %521 = vmatprep.subr.bf16.mxu1 %v574_v22 }
  0x17   :  { %500 = vmatpush3.bf16.msra.mxu0 %v573_v21 }
  0x18   :  { %501 = vmatprep.subr.bf16.mxu0 %v576_v24 }
  0x19   :  { %522 = vmatpush3.bf16.msra.mxu1 %v575_v23 }
  0x1a   :  { %523 = vmatprep.subr.bf16.mxu1 %v578_v26 }
  0x1b   :  { %502 = vmatpush3.bf16.msra.mxu0 %v577_v25 }
  0x1c   :  { %503 = vmatprep.subr.bf16.mxu0 %v580_v28 }
  0x1d   :  { %524 = vmatpush3.bf16.msra.mxu1 %v579_v27 }
  0x1e   :  { %525 = vmatprep.subr.bf16.mxu1 %v582_v30 }
  0x1f   :  { %504 = vmatpush3.bf16.msra.mxu0 %v581_v29 }
  0x20   :  { %538 = vmatprep.subr.bf16.mxu0 %v588_v35 }
  0x21   :  { %526 = vmatpush3.bf16.msra.mxu1 %v583_v33 }
  0x22   :  { %357 = vmatmul.mubr.bf16.vlgmr.msra.gmra.mrb[0].mxu0 %v20_v37 }
  0x23   :  { %539 = vmatpush3.bf16.msra.mxu0 %v584_v39  ;;  %546 = vmatprep.mubr.msk.bf16.mxu0 %vm589_vm0, %v588_v35 }
  0x24   :  { %397 = vmatmul.mubr.bf16.vlgmr.msra.gmra.mrb[0].mxu1 %v22_v41  ;;  %540 = vmatprep.subr.bf16.mxu0 %v588_v35 }
  0x27   :  { %541 = vmatpush3.bf16.msra.mxu0 %v585_v42 }
  0x28   :  { %542 = vmatprep.subr.bf16.mxu0 %v588_v35 }
  0x2b   :  { %543 = vmatpush3.bf16.msra.mxu0 %v586_v43 }
  0x2c   :  { %544 = vmatprep.subr.bf16.mxu0 %v588_v35 }
  0x2f   :  { %545 = vmatpush3.bf16.msra.mxu0 %v587_v44 }
  0x32   :  { %547 = vmatmul.mubr.msk.bf16.vlgmr.msra.gmra.mrb[4].mxu0 %vm320_vm1, %v24_v46 }
  0xf5   :  { %v505_v47 = vpop.f32.mrb[0].mxu0 }
  0xf6   :  { %v506_v49 = vpop.f32.mrb[1].mxu0 }
  0xf7   :  { %v507_v50 = vadd.f32 %v506_v49, %v505_v47  ;;  %v508_v51 = vpop.f32.mrb[2].mxu0  ;;  %v527_v52 = vpop.f32.mrb[0].mxu1 }
  0xf8   :  { %v509_v53 = vpop.f32.mrb[3].mxu0  ;;  %v528_v54 = vpop.f32.mrb[1].mxu1 }
  0xf9   :  { %v359_v55 = vadd.f32 %v507_v50, %v451_v48  ;;  %v529_v56 = vadd.f32 %v528_v54, %v527_v52  ;;  %v530_v57 = vpop.f32.mrb[2].mxu1 }
  0xfa   :  { %v531_v58 = vpop.f32.mrb[3].mxu1 }
  0xfb   :  { %v399_v59 = vadd.f32 %v529_v56, %v359_v55 }
 0x105   :  { %v438_v60 = vpop.f32.mrb[4].mxu0 }
 0x106   :  { %v439_v61 = vadd.f32 %v438_v60, %v399_v59  ;;  %v548_v62 = vpop.f32.mrb[5].mxu0 }
 0x107   :  { %v441_v63 = vpop.f32.mrb[6].mxu0 }
 0x108   :  { %v444_v0 = vmax.f32 %v439_v61, 0.0  ;;  %v549_v1 = vpop.f32.mrb[7].mxu0 }
 0x10a   :  { %446 = vst.msk [vmem:[%s742_s3] sm:$0xff] %vm445_vm2, %v444_v0 }

// kernel: ddaqn_forward.8
= control target key start
LH: loop header
LB: loop body
LE: loop exit
PB: predicated region body
PF: predicated region fallthrough
CT: control target
= control target key end

     0   :  { %s2333_s29 = smov 0   ;;  %s2629_s0 = inlined_call_operand.vmem [shape: f32[2,4,288], index: 0, kind: input, shape index: {}]   ;;  %s2630_s1 = inlined_call_operand.vmem [shape: f32[2,288,4], index: 1, kind: input, shape index: {}]   ;;  %s2631_s2 = inlined_call_operand.vmem [shape: bf16[288,32], index: 2, kind: input, shape index: {}]   ;;  %s2632_s3 = inlined_call_operand.vmem [shape: f32[1,32], index: 3, kind: input, shape index: {}]   ;;  %s2633_s4 = inlined_call_operand.vmem [shape: bf16[288,32], index: 4, kind: input, shape index: {}]   ;;  %s2634_s5 = inlined_call_operand.vmem [shape: f32[1,32], index: 5, kind: input, shape index: {}]   ;;  %s2635_s6 = inlined_call_operand.vmem [shape: bf16[32,288], index: 6, kind: input, shape index: {}]   ;;  %s2636_s7 = inlined_call_operand.vmem [shape: f32[32,1], index: 7, kind: input, shape index: {}]   ;;  %s2637_s8 = inlined_call_operand.vmem [shape: bf16[32,96], index: 8, kind: input, shape index: {}]   ;;  %s2638_s9 = inlined_call_operand.vmem [shape: f32[1,96], index: 9, kind: input, shape index: {}]   ;;  %s2639_s10 = inlined_call_operand.vmem [shape: bf16[32,32], index: 10, kind: input, shape index: {}]   ;;  %s2640_s11 = inlined_call_operand.vmem [shape: f32[1,32], index: 11, kind: input, shape index: {}]   ;;  %s2641_s12 = inlined_call_operand.vmem [shape: f32[4,4], index: 12, kind: input, shape index: {}]   ;;  %s2642_s13 = inlined_call_operand.vmem [shape: f32[4,1], index: 13, kind: input, shape index: {}]   ;;  %s2643_s14 = inlined_call_operand.vmem [shape: f32[2,4,32], index: 14, kind: output, shape index: {}]  }
   0x1 LB: > { %s1865_s30 = sadd.s32 4294967295, %s2250_s29   ;;  %p1869_p0 = scmp.ge.s32.totalorder %s2250_s29, 1  ;;  %s2250_s29 = sphi %s2333_s29, %s24_s29  }
   0x2   : > { %p422_p1 = scmp.lt.s32.totalorder %s2250_s29, 3 }
   0x4   : > { %p423_p2 = pnand %p1869_p0, %p422_p1 }
   0x5   : > { %v2175_v0 = vld [vmem:[%s2631_s2 + $0x40] sm:$0xff] (!%p423_p2)   ;;  %v2252_v2 = vmov (!%p423_p2), 0.0   ;;  %p472_p3 = scmp.lt.s32.totalorder (!%p423_p2), %s1865_s30, 1  ;;  %v2177_v3 = vld [vmem:[%s2631_s2 + $0x48] sm:$0xff] (!%p423_p2)   ;;  %vm2253_vm0 = vmmov (!%p423_p2), 0   ;;  %v2179_v5 = vld [vmem:[%s2631_s2 + $0x50] sm:$0xff] (!%p423_p2)  }
   0x6   : > { %426 = sbr.rel (%p423_p2) target bundleno = 1779 (0x6f3), region = 76  ;;  %v2176_v1 = vld [vmem:[%s2631_s2] sm:$0xff] (!%p423_p2)   ;;  %2057 = vmatprep.subr.bf16.mxu1 (!%p423_p2), %v2252_v2  ;;  %1950 = vmatprep.subr.bf16.mxu0 (!%p423_p2), %v2175_v0  ;;  %v2178_v4 = vld [vmem:[%s2631_s2 + $0x8] sm:$0xff] (!%p423_p2)   ;;  %v2180_v6 = vld [vmem:[%s2631_s2 + $0x10] sm:$0xff] (!%p423_p2)   ;;  %vm700_vm1 = vcmask (!%p423_p2), 261120   ;;  %s2255_s27 = smov (!%p423_p2), 96  }
   0x7   : > { %1951 = vmatpush3.bf16.msra.mxu0 (!%p423_p2), %v2176_v1  ;;  %2061 = vmatprep.mubr.msk.bf16.mxu1 (!%p423_p2), %vm2253_vm0, %v2252_v2  ;;  %v2181_v7 = vld [vmem:[%s2631_s2 + $0x58] sm:$0xff] (!%p423_p2)   ;;  %v2183_v9 = vld [vmem:[%s2631_s2 + $0x60] sm:$0xff] (!%p423_p2)   ;;  %v2185_v12 = vld [vmem:[%s2631_s2 + $0x68] sm:$0xff] (!%p423_p2)   ;;  %vm1340_vm2 = vcmask (!%p423_p2), 31744   ;;  %vm1326_vm4 = vcmask (!%p423_p2), 27648   ;;  %s2256_s17 = smov (!%p423_p2), 64  }
   0x8   : > { %1952 = vmatprep.subr.bf16.mxu0 (!%p423_p2), %v2177_v3  ;;  %v2182_v8 = vld [vmem:[%s2631_s2 + $0x18] sm:$0xff] (!%p423_p2)   ;;  %v2189_v10 = vld [vmem:[%s2631_s2 + $0x80] sm:$0xff] (!%p423_p2)   ;;  %v2193_v16 = vld [vmem:[%s2631_s2 + $0x88] sm:$0xff] (!%p423_p2)   ;;  %vm1344_vm5 = vcmask (!%p423_p2), 1043456   ;;  %vm1798_vm7 = vcmask (!%p423_p2), 257024  }
   0x9   : > { %v2184_v11 = vld [vmem:[%s2631_s2 + $0x20] sm:$0xff] (!%p423_p2)   ;;  %2058 = vmatpush3.bf16.msra.mxu1 (!%p423_p2), %v2189_v10  ;;  %v2186_v17 = vld [vmem:[%s2631_s2 + $0x28] sm:$0xff] (!%p423_p2)   ;;  %v2187_v19 = vld [vmem:[%s2631_s2 + $0x70] sm:$0xff] (!%p423_p2)  }
   0xa   : > { %2059 = vmatprep.subr.bf16.mxu1 (!%p423_p2), %v2252_v2  ;;  %v2196_v21 = vld [vmem:[%s2633_s4 + $0x40] sm:$0xff] (!%p423_p2)   ;;  %v2188_v22 = vld [vmem:[%s2631_s2 + $0x30] sm:$0xff] (!%p423_p2)   ;;  %v2190_v23 = vld [vmem:[%s2631_s2 + $0x78] sm:$0xff] (!%p423_p2)  }
   0xb   : > { %1953 = vmatpush3.bf16.msra.mxu0 (!%p423_p2), %v2178_v4  ;;  %v2197_v24 = vld [vmem:[%s2633_s4] sm:$0xff] (!%p423_p2)   ;;  %v2191_v25 = vld [vmem:[%s2631_s2 + $0x38] sm:$0xff] (!%p423_p2)   ;;  %v2198_v26 = vld [vmem:[%s2633_s4 + $0x48] sm:$0xff] (!%p423_p2)  }
   0xc   : > { %1954 = vmatprep.subr.bf16.mxu0 (!%p423_p2), %v2179_v5  ;;  %v2199_v27 = vld [vmem:[%s2633_s4 + $0x8] sm:$0xff] (!%p423_p2)   ;;  %v2200_v28 = vld [vmem:[%s2633_s4 + $0x50] sm:$0xff] (!%p423_p2)   ;;  %v2194_v30 = vld [vmem:[%s2633_s4 + $0x80] sm:$0xff] (!%p423_p2)  }
   0xd   : > { %s2645_s30 = smov (!%p472_p3, %s1865_s30), 1  ;;  %2060 = vmatpush3.bf16.msra.mxu1 %v2193_v16  ;;  %v2201_v31 = vld [vmem:[%s2633_s4 + $0x10] sm:$0xff]   ;;  %v2202_v32 = vld [vmem:[%s2633_s4 + $0x58] sm:$0xff]   ;;  %v2195_v35 = vld [vmem:[%s2633_s4 + $0x88] sm:$0xff]  }
   0xe   : > { %s2157_s15 = smul.u32 12, %s2645_s30  ;;  %1975 = vmatprep.subr.bf16.mxu1 %v2196_v21  ;;  %v2203_v36 = vld [vmem:[%s2633_s4 + $0x18] sm:$0xff]   ;;  %v2204_v41 = vld [vmem:[%s2633_s4 + $0x60] sm:$0xff]   ;;  %v2206_v46 = vld [vmem:[%s2633_s4 + $0x68] sm:$0xff]  }
   0xf   : > { %1955 = vmatpush3.bf16.msra.mxu0 %v2180_v6  ;;  %v2205_v43 = vld [vmem:[%s2633_s4 + $0x20] sm:$0xff]   ;;  %v2207_v51 = vld [vmem:[%s2633_s4 + $0x28] sm:$0xff]   ;;  %v2208_v54 = vld [vmem:[%s2633_s4 + $0x70] sm:$0xff]  }
  0x10   : > { %1956 = vmatprep.subr.bf16.mxu0 %v2181_v7  ;;  %s476_s24 = scalar_lea.vmem %s2629_s0, %s2157_s15  ;;  %s2158_s15 = smul.u32 288, %s2645_s30  ;;  %v2209_v61 = vld [vmem:[%s2633_s4 + $0x30] sm:$0xff]   ;;  %v2213_v1 = vld [vmem:[%s2633_s4 + $0x78] sm:$0xff]   ;;  %vm2138_vm3 = vmpackc.low %vm1340_vm2, %vm1340_vm2 }
  0x11   : > { %v487_v13 = vld [vmem:[%s476_s24] sm:$0xff]  ;;  %v488_v14 = vld [vmem:[%s476_s24 + $0x8] sm:$0xf]  ;;  %vm2151_vm6 = vmpackc.low %vm700_vm1, %vm700_vm1 }
  0x12   : > { %v490_v15 = vcombine.high %v487_v13, %v487_v13  ;;  %v494_v18 = vpack.c.bf16 %v488_v14, %v488_v14  ;;  %s2425_s26 = scalar_lea.vmem %s2630_s1, %s2158_s15  ;;  %v2427_v29 = vpack.c.bf16 %v487_v13, %v487_v13  ;;  %v2212_v62 = vld [vmem:[%s2635_s6 + $0x4] ss:$12 sps:$4 sm:$0xff]  }
  0x13   : > { %1957 = vmatpush3.bf16.msra.mxu0 %v2182_v8  ;;  %v511_v33 = vld [vmem:[%s2425_s26 + $0x80] sm:$0xff]  ;;  %v512_v34 = vld [vmem:[%s2425_s26 + $0x88] sm:$0xff]  ;;  %v513_v40 = vld [vmem:[%s2425_s26 + $0x90] sm:$0xff] }
  0x14   : > { %1958 = vmatprep.subr.bf16.mxu0 %v2183_v9  ;;  %v493_v20 = vpack.c.bf16 %v490_v15, %v490_v15  ;;  %2062 = vmatmul.mubr.msk.bf16.vlgmr.msra.gmra.mrb[0].mxu1 %vm700_vm1, %v494_v18  ;;  %v495_v37 = vld [vmem:[%s2425_s26] sm:$0xff]  ;;  %v539_v38 = vpack.c.bf16 %v512_v34, %v511_v33  ;;  %v496_v39 = vld [vmem:[%s2425_s26 + $0x8] sm:$0xff]  ;;  %v514_v42 = vld [vmem:[%s2425_s26 + $0x98] sm:$0xff] }
  0x15   : > { %1976 = vmatpush3.bf16.msra.mxu1 %v2197_v24  ;;  %v531_v44 = vpack.c.bf16 %v496_v39, %v495_v37  ;;  %v497_v45 = vld [vmem:[%s2425_s26 + $0x10] sm:$0xff]  ;;  %v540_v47 = vpack.c.bf16 %v514_v42, %v513_v40  ;;  %v498_v48 = vld [vmem:[%s2425_s26 + $0x18] sm:$0xff]  ;;  %v515_v49 = vld [vmem:[%s2425_s26 + $0xa0] sm:$0xff] }
  0x16   : > { %736 = vmatprep.mubr.bf16.mxu0 %v493_v20  ;;  %967 = vmatprep.mubr.bf16.mxu1 %v493_v20  ;;  %v516_v50 = vld [vmem:[%s2425_s26 + $0xa8] sm:$0xff]  ;;  %v532_v52 = vpack.c.bf16 %v498_v48, %v497_v45  ;;  %v499_v53 = vld [vmem:[%s2425_s26 + $0x20] sm:$0xff]  ;;  %v517_v57 = vld [vmem:[%s2425_s26 + $0xb0] sm:$0xff] }
  0x17   : > { %1959 = vmatpush3.bf16.msra.mxu0 %v2184_v11  ;;  %1977 = vmatprep.subr.bf16.mxu1 %v2198_v26  ;;  %v541_v55 = vpack.c.bf16 %v516_v50, %v515_v49  ;;  %v500_v56 = vld [vmem:[%s2425_s26 + $0x28] sm:$0xff]  ;;  %v518_v58 = vld [vmem:[%s2425_s26 + $0xb8] sm:$0xff]  ;;  %v501_v59 = vld [vmem:[%s2425_s26 + $0x30] sm:$0xff] }
  0x18   : > { %1960 = vmatprep.subr.bf16.mxu0 %v2185_v12  ;;  %v502_v60 = vld [vmem:[%s2425_s26 + $0x38] sm:$0xff]  ;;  %v533_v63 = vpack.c.bf16 %v500_v56, %v499_v53  ;;  %v519_v0 = vld [vmem:[%s2425_s26 + $0xc0] sm:$0xff]  ;;  %v542_v3 = vpack.c.bf16 %v518_v58, %v517_v57  ;;  %v520_v4 = vld [vmem:[%s2425_s26 + $0xc8] sm:$0xff] }
  0x19   : > { %1978 = vmatpush3.bf16.msra.mxu1 %v2199_v27  ;;  %v527_v5 = vld [vmem:[%s2425_s26 + $0x100] sm:$0xff]  ;;  %v528_v6 = vld [vmem:[%s2425_s26 + $0x108] sm:$0xff]  ;;  %v2214_v9 = vld [vmem:[%s2633_s4 + $0x38] sm:$0xff]   ;;  %v534_v10 = vpack.c.bf16 %v502_v60, %v501_v59  ;;  %v543_v15 = vpack.c.bf16 %v520_v4, %v519_v0 }
  0x1a   : > { %1979 = vmatprep.subr.bf16.mxu1 %v2200_v28  ;;  %v503_v7 = vld [vmem:[%s2425_s26 + $0x40] sm:$0xff]  ;;  %v504_v8 = vld [vmem:[%s2425_s26 + $0x48] sm:$0xff]  ;;  %v521_v11 = vld [vmem:[%s2425_s26 + $0xd0] sm:$0xff]  ;;  %v547_v13 = vpack.c.bf16 %v528_v6, %v527_v5 }
  0x1b   : > { %1961 = vmatpush3.bf16.msra.mxu0 %v2186_v17  ;;  %v522_v12 = vld [vmem:[%s2425_s26 + $0xd8] sm:$0xff]  ;;  %v529_v14 = vld [vmem:[%s2425_s26 + $0x110] sm:$0xff]  ;;  %v524_v24 = vld [vmem:[%s2425_s26 + $0xe8] sm:$0xff] }
  0x1c   : > { %1962 = vmatprep.subr.bf16.mxu0 %v2187_v19  ;;  %v530_v16 = vld [vmem:[%s2425_s26 + $0x118] sm:$0xff]  ;;  %v2218_v17 = vld [vmem:[%s2635_s6 + $0x8] ss:$12 sps:$4 sm:$0xff]   ;;  %v544_v20 = vpack.c.bf16 %v522_v12, %v521_v11  ;;  %v507_v27 = vld [vmem:[%s2425_s26 + $0x60] sm:$0xff] }
  0x1d   : > { %1980 = vmatpush3.bf16.msra.mxu1 %v2201_v31  ;;  %v548_v19 = vpack.c.bf16 %v530_v16, %v529_v14  ;;  %v505_v21 = vld [vmem:[%s2425_s26 + $0x50] sm:$0xff]  ;;  %v508_v28 = vld [vmem:[%s2425_s26 + $0x68] sm:$0xff]  ;;  %v526_v31 = vld [vmem:[%s2425_s26 + $0xf8] sm:$0xff] }
  0x1e   : > { %1981 = vmatprep.subr.bf16.mxu1 %v2202_v32  ;;  %v2219_v32 = vld [vmem:[%s2635_s6 + $0x20] ss:$12 sps:$4 sm:$0xff]   ;;  %v509_v34 = vld [vmem:[%s2425_s26 + $0x70] sm:$0xff]  ;;  %v2217_v39 = vld [vmem:[%s2635_s6 + $0x18] ss:$12 sps:$4 sm:$0xff]  }
  0x1f   : > { %1963 = vmatpush3.bf16.msra.mxu0 %v2188_v22  ;;  %v506_v22 = vld [vmem:[%s2425_s26 + $0x58] sm:$0xff]  ;;  %v2210_v37 = vld [vmem:[%s2635_s6] ss:$12 sps:$4 sm:$0xff]  }
  0x20   : > { %1964 = vmatprep.subr.bf16.mxu0 %v2190_v23  ;;  %v523_v23 = vld [vmem:[%s2425_s26 + $0xe0] sm:$0xff]  ;;  %v1024_v42 = vld [vmem:[%s2636_s7 + $0x8] sm:$0xff]  ;;  %v1026_v45 = vld [vmem:[%s2636_s7 + $0x18] sm:$0xff] }
  0x21   : > { %1982 = vmatpush3.bf16.msra.mxu1 %v2203_v36  ;;  %v545_v26 = vpack.c.bf16 %v524_v24, %v523_v23  ;;  %v2220_v40 = vld [vmem:[%s2637_s8] sm:$0xff]  }
  0x22   : > { %1983 = vmatprep.subr.bf16.mxu1 %v2204_v41  ;;  %v2221_v41 = vld [vmem:[%s2637_s8 + $0x8] sm:$0xff]   ;;  %v1893_v0 = vld [vmem:[%s2634_s5] ss:$0 sm:$0xff] }
  0x23   : > { %1965 = vmatpush3.bf16.msra.mxu0 %v2191_v25  ;;  %v536_v25 = vpack.c.bf16 %v506_v22, %v505_v21 }
  0x24   : > { %2065 = vmatprep.subr.bf16.mxu0 %v2252_v2 }
  0x25   : > { %1984 = vmatpush3.bf16.msra.mxu1 %v2205_v43  ;;  %v2254_v43 = vmov 0  }
  0x26   : > { %737 = vmatmul.mubr.bf16.vlgmr.msra.gmra.mrb[0].mxu0 %v2427_v29  ;;  %1985 = vmatprep.subr.bf16.mxu1 %v2206_v46 }
  0x27   : > { %2066 = vmatpush3.bf16.msra.mxu0 %v2194_v30  ;;  %2069 = vmatprep.mubr.msk.bf16.mxu0 %vm2253_vm0, %v2252_v2  ;;  %v525_v30 = vld [vmem:[%s2425_s26 + $0xf0] sm:$0xff] }
  0x28   : > { %2067 = vmatprep.subr.bf16.mxu0 %v2252_v2  ;;  %v546_v33 = vpack.c.bf16 %v526_v31, %v525_v30  ;;  %2174 = vset.pattern.permute.xlu1 %v2254_v43 }
  0x29   : > { %1986 = vmatpush3.bf16.msra.mxu1 %v2207_v51  ;;  %2173 = vset.pattern.permute.xlu0 %v2254_v43 }
  0x2a   : > { %1987 = vmatprep.subr.bf16.mxu1 %v2208_v54  ;;  %1034 = vperm.xlu1 %2174, %v1024_v42  }
  0x2b   : > { %2068 = vmatpush3.bf16.msra.mxu0 %v2195_v35  ;;  %v510_v35 = vld [vmem:[%s2425_s26 + $0x78] sm:$0xff] }
  0x2c   : > { %2000 = vmatprep.subr.bf16.mxu0 %v539_v38  ;;  %v538_v36 = vpack.c.bf16 %v510_v35, %v509_v34  ;;  %v2215_v38 = vld [vmem:[%s2635_s6 + $0x1c] ss:$12 sps:$4 sm:$0xff]   ;;  %v1921_v34 = vld [vmem:[%s2638_s9] ss:$0 sm:$0xff] }
  0x2d   : > { %1988 = vmatpush3.bf16.msra.mxu1 %v2209_v61 }
  0x2e   : > { %2070 = vmatmul.mubr.msk.bf16.vlgmr.msra.gmra.mrb[4].mxu0 %vm700_vm1, %v494_v18  ;;  %1989 = vmatprep.subr.bf16.mxu1 %v2213_v1  ;;  %v535_v18 = vpack.c.bf16 %v504_v8, %v503_v7 }
  0x2f   : > { %2001 = vmatpush3.bf16.msra.mxu0 %v531_v44  ;;  %1115 = vmatprep.mubr.bf16.mxu0 %v2212_v62  ;;  %v1025_v44 = vld [vmem:[%s2636_s7 + $0x10] sm:$0xff] }
  0x30   : > { %2002 = vmatprep.subr.bf16.mxu0 %v540_v47  ;;  %1039 = vperm.xlu1 %2174, %v1025_v44  }
  0x31   : > { %1990 = vmatpush3.bf16.msra.mxu1 %v2214_v9 }
  0x32   : > { %2073 = vmatprep.subr.bf16.mxu1 %v547_v13 }
  0x33   : > { %2003 = vmatpush3.bf16.msra.mxu0 %v532_v52  ;;  %v1873_v52 = vld [vmem:[%s2632_s3] ss:$0 sm:$0xff] }
  0x34   : > { %2004 = vmatprep.subr.bf16.mxu0 %v541_v55  ;;  %968 = vmatmul.mubr.bf16.vlgmr.msra.gmra.mrb[4].mxu1 %v2427_v29  ;;  %v537_v29 = vpack.c.bf16 %v508_v28, %v507_v27 }
  0x35   : > { %2074 = vmatpush3.bf16.msra.mxu1 %v547_v13  ;;  %2077 = vmatprep.mubr.msk.bf16.mxu1 %vm700_vm1, %v2218_v17 }
  0x36   : > { %2075 = vmatprep.subr.bf16.mxu1 %v548_v19  ;;  %1044 = vperm.xlu1 %2174, %v1026_v45  }
  0x37   : > { %2005 = vmatpush3.bf16.msra.mxu0 %v533_v63 }
  0x38   : > { %2006 = vmatprep.subr.bf16.mxu0 %v542_v3 }
  0x39   : > { %2076 = vmatpush3.bf16.msra.mxu1 %v548_v19 }
  0x3a   : > { %2081 = vmatprep.subr.bf16.mxu1 %v2252_v2 }
  0x3b   : > { %2007 = vmatpush3.bf16.msra.mxu0 %v534_v10 }
  0x3c   : > { %2008 = vmatprep.subr.bf16.mxu0 %v543_v15  ;;  %2078 = vmatmul.mubr.msk.bf16.vlgmr.msra.gmra.mrb[8].mxu1 %vm700_vm1, %v2219_v32 }
  0x3d   : > { %2085 = vmatprep.mubr.msk.bf16.mxu1 %vm2253_vm0, %v2252_v2  ;;  %2082 = vmatpush3.bf16.msra.mxu1 %v2220_v40  ;;  %v1023_v40 = vld [vmem:[%s2636_s7] sm:$0xff] }
  0x3e   : > { %2083 = vmatprep.subr.bf16.mxu1 %v2252_v2 }
  0x3f   : > { %2009 = vmatpush3.bf16.msra.mxu0 %v535_v18 }
  0x40   : > { %2010 = vmatprep.subr.bf16.mxu0 %v544_v20 }
  0x41   : > { %2084 = vmatpush3.bf16.msra.mxu1 %v2221_v41 }
  0x42   : > { %2089 = vmatprep.subr.mxu1 %v2252_v2 }
  0x43   : > { %2011 = vmatpush3.bf16.msra.mxu0 %v536_v25 }
  0x44   : > { %2012 = vmatprep.subr.bf16.mxu0 %v545_v26 }
  0x47   : > { %2013 = vmatpush3.bf16.msra.mxu0 %v537_v29 }
  0x48   : > { %2014 = vmatprep.subr.bf16.mxu0 %v546_v33 }
  0x4b   : > { %2015 = vmatpush3.bf16.msra.mxu0 %v538_v36 }
  0x4e   : > { %1116 = vmatmul.mubr.bf16.vlgmr.msra.gmra.mrb[8].mxu0 %v2210_v37 }
  0x4f   : > { %1123 = vmatprep.mubr.bf16.mxu0 %v2215_v38 }
  0x56   : > { %1124 = vmatmul.mubr.bf16.gmra.mrb[12].mxu0 %v2217_v39 }
  0xa9   : > { %v1035_v12 = vpop.permute.xlu1 %1034 }
  0xaf   : > { %v1040_v19 = vpop.permute.xlu1 %1039 }
  0xb5   : > { %v1045_v27 = vpop.permute.xlu1 %1044 }
  0xe7   : > { %v778_v46 = vpop.f32.mrb[0].mxu1 }
  0xe8   : > { %v2063_v47 = vpop.f32.mrb[1].mxu1 }
  0xe9   : > { %v781_v48 = vpop.f32.mrb[2].mxu1 }
  0xea   : > { %v2064_v49 = vpop.f32.mrb[3].mxu1 }
  0xf9   : > { %v1966_v50 = vpop.f32.mrb[0].mxu0 }
  0xfa   : > { %v1967_v51 = vpop.f32.mrb[1].mxu0 }
  0xfb   : > { %v1968_v53 = vadd.f32 %v1967_v51, %v1966_v50  ;;  %v1969_v54 = vpop.f32.mrb[2].mxu0 }
  0xfc   : > { %v1970_v55 = vpop.f32.mrb[3].mxu0 }
  0xfd   : > { %v739_v56 = vadd.f32 %v1968_v53, %v1873_v52 }
  0xff   : > { %v779_v57 = vadd.f32 %v778_v46, %v739_v56 }
 0x101   : > { %v1181_v58 = vpack.c.bf16 %v779_v57, %v779_v57  ;;  %v1009_v59 = vpop.f32.mrb[4].mxu0 }
 0x102   : > { %v2071_v60 = vpop.f32.mrb[5].mxu0 }
 0x103   : > { %2086 = vmatmul.mubr.msk.bf16.vlgmr.msra.gmra.mrb[12].mxu1 %vm700_vm1, %v1181_v58  ;;  %v1012_v61 = vpop.f32.mrb[6].mxu0 }
 0x104   : > { %v2072_v62 = vpop.f32.mrb[7].mxu0  ;;  %2091 = vmatprep.mubr.msk.f32.mxu1 %vm2253_vm0, %v2252_v2 }
 0x107   : > { %v1991_v63 = vpop.f32.mrb[4].mxu1 }
 0x108   : > { %v1992_v1 = vpop.f32.mrb[5].mxu1 }
 0x109   : > { %v1993_v3 = vadd.f32 %v1992_v1, %v1991_v63  ;;  %v1994_v4 = vpop.f32.mrb[6].mxu1 }
 0x10a   : > { %v1995_v5 = vpop.f32.mrb[7].mxu1 }
 0x10b   : > { %v970_v6 = vadd.f32 %v1993_v3, %v1893_v0 }
 0x10d   : > { %v2560_v7 = vadd.f32 %v1009_v59, %v970_v6 }
 0x10f   : > { %v2079_v8 = vpop.f32.mrb[8].mxu1 }
 0x110   : > { %v1166_v9 = vpop.f32.mrb[9].mxu1 }
 0x111   : > { %v2080_v10 = vpop.f32.mrb[10].mxu1 }
 0x112   : > { %v1169_v11 = vpop.f32.mrb[11].mxu1 }
 0x121   : > { %v2016_v13 = vpop.f32.mrb[8].mxu0 }
 0x122   : > { %v2017_v14 = vpop.f32.mrb[9].mxu0 }
 0x123   : > { %v2018_v15 = vadd.f32 %v2017_v14, %v2016_v13  ;;  %v2019_v16 = vpop.f32.mrb[10].mxu0 }
 0x124   : > { %v2020_v17 = vpop.f32.mrb[11].mxu0 }
 0x125   : > { %v2021_v18 = vadd.f32 %v2020_v17, %v2019_v16 }
 0x127   : > { %v1121_v20 = vadd.f32 %v2021_v18, %v1035_v12 }
 0x129   : > { %v2022_v21 = vpop.f32.mrb[12].mxu0  ;;  %v1170_v22 = vadd.f32 %v1169_v11, %v1121_v20 }
 0x12a   : > { %v2023_v23 = vpop.f32.mrb[13].mxu0 }
 0x12b   : > { %v2024_v24 = vadd.f32 %v2023_v23, %v2022_v21  ;;  %v2025_v25 = vpop.f32.mrb[14].mxu0 }
 0x12c   : > { %v2026_v26 = vpop.f32.mrb[15].mxu0 }
 0x12d   : > { %v2027_v28 = vadd.f32 %v2026_v26, %v2025_v25  ;;  %v1126_v30 = vadd.f32 %v2024_v24, %v1040_v19 }
 0x12f   : > { %v1175_v31 = vadd.f32 %v2079_v8, %v1126_v30  ;;  %v1129_v32 = vadd.f32 %v2027_v28, %v1045_v27  ;;  %v1715_v30 = vld [vmem:[%s2642_s13] sm:$0xf] }
 0x131   : > { %v1178_v29 = vadd.f32 %v2080_v10, %v1129_v32  ;;  %v2223_v32 = vld [vmem:[%s2639_s10 + $0x8] sm:$0xff]  }
 0x133   : > { %v2143_v33 = vpack.c.bf16 %v1178_v29, %v1175_v31 }
 0x1d6   : > { %v1242_v35 = vpop.f32.mrb[12].mxu1 }
 0x1d7   : > { %v1243_v36 = vadd.f32 %v1921_v34, %v1242_v35  ;;  %v2087_v37 = vpop.f32.mrb[13].mxu1 }
 0x1d8   : > { %v1245_v38 = vpop.f32.mrb[14].mxu1 }
 0x1d9   : > { %1249 = vrot.lane.b32.xlu0 %v1243_v36, %s2255_s27  ;;  %v2088_v39 = vpop.f32.mrb[15].mxu1  ;;  %s1872_s27 = sshll.u32 %s2645_s30, 2 }
 0x1dd   : > { %1029 = vperm.xlu0 %2173, %v1023_v40  }
 0x24b   : > { %v1250_v41 = vpop.permute.xlu0 %1249 }
 0x24c   : > { %2090 = vmatpush3.xpose.msk.msra.mxu1 %vm700_vm1, %v1250_v41 }
 0x24d   : > { %2094 = vmatprep.subr.mxu1 %v2252_v2 }
 0x24f   : > { %2092 = vmatmul.mubr.msk.f32.vlgmr.msra.gmra.mrb[16].mxu1 %vm700_vm1, %v1243_v36 }
 0x250   : > { %2096 = vmatprep.mubr.msk.f32.mxu1 %vm2253_vm0, %v2252_v2 }
 0x25c   : > { %v1030_v42 = vpop.permute.xlu0 %1029 }
 0x25d   : > { %v1118_v43 = vadd.f32 %v2018_v15, %v1030_v42 }
 0x25f   : > { %v1167_v44 = vadd.f32 %v1166_v9, %v1118_v43 }
 0x261   : > { %v2137_v45 = vpack.c.bf16 %v1170_v22, %v1167_v44  ;;  %2115 = vmatprep.mubr.msk.f32.mxu0 %vm1340_vm2, %v1167_v44 }
 0x263   : > { %2139 = vmatprep.subr.msk.bf16.mxu0 %vm2138_vm3, %v2137_v45 }
 0x264   : > { %2142 = vmatpush3.bf16.xpose.msk.msra.mxu0 %vm2138_vm3, %v2137_v45 }
 0x265   : > { %2145 = vmatprep.subr.msk.bf16.mxu0 %vm2138_vm3, %v2143_v33 }
 0x26c   : > { %2148 = vmatpush3.bf16.xpose.msk.msra.mxu0 %vm2138_vm3, %v2143_v33 }
 0x26d   : > { %2132 = vmatprep.subr.mxu0 %v2252_v2 }
 0x273   : > { %2116 = vmatmul.mubr.msk.f32.vlgmr.msra.gmra.mrb[16].mxu0 %vm1340_vm2, %v1170_v22 }
 0x274   : > { %2118 = vmatprep.mubr.msk.f32.mxu0 %vm1340_vm2, %v1175_v31  ;;  %v2222_v31 = vld [vmem:[%s2639_s10] sm:$0xff]  }
 0x277   : > { %2119 = vmatmul.mubr.msk.f32.gmra.mrb[18].mxu0 %vm1340_vm2, %v1178_v29  ;;  %v2257_v29 = vmov 0.0|0.0  }
 0x278   : > { %2134 = vmatprep.mubr.msk.f32.mxu0 %vm2253_vm0, %v2252_v2 }
 0x322   : > { %v1321_v46 = vpop.f32.mrb[16].mxu1 }
 0x323   : > { %v1325_v47 = vmul.f32 0.17677669, %v1321_v46  ;;  %v2093_v48 = vpop.f32.mrb[17].mxu1 }
 0x325   : > { %v1327_v49 = vsel %vm1326_vm4, %v1325_v47, -inf }
 0x326   : > { %1328 = vmax.xlane.f32.xlu0 %v1327_v49 }
 0x33c   : > { %1338 = vrot.lane.b32.xlu0 %v1243_v36, %s2256_s17  ;;  %s485_s17 = scalar_lea.vmem %s2643_s14, %s1872_s27 }
 0x346   : > { %v2117_v50 = vpop.f32.mrb[16].mxu0 }
 0x347   : > { %v1562_v51 = vpop.f32.mrb[17].mxu0  ;;  %v1582_v61 = vmul.f32 0.5, %v2117_v50 }
 0x348   : > { %v1581_v59 = vmul.f32 0.5, %v1562_v51 }
 0x349   : > { %v1588_v0 = vsel %vm700_vm1, %v1582_v61, -inf }
 0x34a   : > { %v2120_v52 = vpop.f32.mrb[18].mxu0  ;;  %v1585_v62 = vsel %vm700_vm1, %v1581_v59, -inf }
 0x34b   : > { %v1572_v53 = vpop.f32.mrb[19].mxu0  ;;  %v1584_v1 = vmul.f32 0.5, %v2120_v52 }
 0x34c   : > { %v1583_v63 = vmul.f32 0.5, %v1572_v53 }
 0x34d   : > { %v1594_v4 = vsel %vm700_vm1, %v1584_v1, -inf }
 0x34e   : > { %v1591_v3 = vsel %vm700_vm1, %v1583_v63, -inf }
 0x3b3   : > { %v1329_v54 = vpop.xlane.xlu0 %1328 }
 0x3b4   : > { %v1330_v55 = vsub.f32 %v1325_v47, %v1329_v54  ;;  %v1714_v54 = vld [vmem:[%s2641_s12] sm:$0xf] }
 0x3b6   : > { %v1331_v56 = vmul.f32 1.442695, %v1330_v55 }
 0x3b7   : > { %v1339_v57 = vpop.permute.xlu0 %1338 }
 0x3b8   : > { %2224 = vpow2.f32 %v1331_v56  ;;  %2095 = vmatpush3.msk.msra.mxu1 %vm1344_vm5, %v1339_v57  ;;  %v1929_v56 = vld [vmem:[%s2640_s11] ss:$0 sm:$0xff] }
 0x3b9   : > { %2099 = vmatprep.subr.bf16.mxu1 %v2252_v2 }
 0x3c2   : > { %v2225_v58 = vpop.eup %2224 }
 0x3c3   : > { %v1333_v60 = vsel %vm1326_vm4, %v2225_v58, 0.0 }
 0x3c4   : > { %1334 = vadd.xlane.f32.xlu1 %v1333_v60 }
 0x3c8   : > { %1586 = vmax.xlane.f32.xlu1 %v1585_v62 }
 0x3cc   : > { %1589 = vmax.xlane.f32.xlu1 %v1588_v0 }
 0x3d0   : > { %1592 = vmax.xlane.f32.xlu1 %v1591_v3 }
 0x3d4   : > { %1595 = vmax.xlane.f32.xlu1 %v1594_v4 }
 0x451   : > { %v1335_v5 = vpop.xlane.xlu1 %1334 }
 0x452   : > { %2226 = vrcp.f32 %v1335_v5 }
 0x455   : > { %v1587_v6 = vpop.xlane.xlu1 %1586 }
 0x456   : > { %v1597_v8 = vsub.f32 %v1581_v59, %v1587_v6 }
 0x458   : > { %v1601_v9 = vmul.f32 1.442695, %v1597_v8 }
 0x459   : > { %v1590_v10 = vpop.xlane.xlu1 %1589 }
 0x45a   : > { %2228 = vpow2.f32 %v1601_v9  ;;  %v1598_v11 = vsub.f32 %v1582_v61, %v1590_v10 }
 0x45c   : > { %v2227_v12 = vpop.eup %2226  ;;  %v1603_v13 = vmul.f32 1.442695, %v1598_v11 }
 0x45d   : > { %v1337_v14 = vmul.f32 %v2227_v12, %v2225_v58  ;;  %v1593_v15 = vpop.xlane.xlu1 %1592 }
 0x45e   : > { %2230 = vpow2.f32 %v1603_v13  ;;  %v1599_v16 = vsub.f32 %v1583_v63, %v1593_v15 }
 0x45f   : > { %2097 = vmatmul.mubr.msk.f32.vlgmr.msra.gmra.mrb[18].mxu1 %vm1340_vm2, %v1337_v14 }
 0x460   : > { %v1605_v17 = vmul.f32 1.442695, %v1599_v16  ;;  %2103 = vmatprep.mubr.msk.bf16.mxu1 %vm2253_vm0, %v2252_v2  ;;  %2100 = vmatpush3.bf16.msra.mxu1 %v2222_v31 }
 0x461   : > { %v1596_v18 = vpop.xlane.xlu1 %1595  ;;  %2101 = vmatprep.subr.bf16.mxu1 %v2252_v2 }
 0x462   : > { %2232 = vpow2.f32 %v1605_v17  ;;  %v1600_v19 = vsub.f32 %v1584_v1, %v1596_v18 }
 0x464   : > { %v2229_v20 = vpop.eup %2228  ;;  %v1607_v21 = vmul.f32 1.442695, %v1600_v19  ;;  %2102 = vmatpush3.bf16.msra.mxu1 %v2223_v32 }
 0x465   : > { %v1609_v22 = vsel %vm700_vm1, %v2229_v20, 0.0  ;;  %2149 = vmatprep.subr.bf16.mxu1 %v2257_v29 }
 0x466   : > { %2234 = vpow2.f32 %v1607_v21  ;;  %1610 = vadd.xlane.f32.xlu1 %v1609_v22 }
 0x468   : > { %v2231_v23 = vpop.eup %2230 }
 0x469   : > { %v1612_v24 = vsel %vm700_vm1, %v2231_v23, 0.0 }
 0x46a   : > { %1613 = vadd.xlane.f32.xlu0 %v1612_v24 }
 0x46c   : > { %v2233_v25 = vpop.eup %2232 }
 0x46d   : > { %v1615_v26 = vsel %vm700_vm1, %v2233_v25, 0.0 }
 0x46e   : > { %1616 = vadd.xlane.f32.xlu1 %v1615_v26 }
 0x470   : > { %v2235_v27 = vpop.eup %2234 }
 0x471   : > { %v1618_v28 = vsel %vm700_vm1, %v2235_v27, 0.0 }
 0x472   : > { %1619 = vadd.xlane.f32.xlu1 %v1618_v28 }
 0x483   : > { %1718 = vperm.xlu1 %2174, %v1715_v30  }
 0x4f3   : > { %v1611_v33 = vpop.xlane.xlu1 %1610 }
 0x4f7   : > { %v1614_v34 = vpop.xlane.xlu0 %1613 }
 0x4f8   : > { %2236 = vrcp.f32 %v1614_v34 }
 0x4f9   : > { %2238 = vrcp.f32 %v1611_v33 }
 0x4fb   : > { %v1617_v35 = vpop.xlane.xlu1 %1616 }
 0x4ff   : > { %v1620_v36 = vpop.xlane.xlu1 %1619 }
 0x500   : > { %2240 = vrcp.f32 %v1620_v36 }
 0x501   : > { %2242 = vrcp.f32 %v1617_v35 }
 0x502   : > { %v2237_v37 = vpop.eup %2236 }
 0x503   : > { %v2239_v38 = vpop.eup %2238  ;;  %v1626_v39 = vmul.f32 %v2237_v37, %v2231_v23 }
 0x504   : > { %v1625_v40 = vmul.f32 %v2239_v38, %v2229_v20 }
 0x506   : > { %v2150_v44 = vpack.c.bf16 %v1626_v39, %v1625_v40 }
 0x50a   : > { %v2241_v45 = vpop.eup %2240 }
 0x50b   : > { %v2243_v46 = vpop.eup %2242  ;;  %v1628_v47 = vmul.f32 %v2241_v45, %v2235_v27 }
 0x50c   : > { %v1627_v48 = vmul.f32 %v2243_v46, %v2233_v25 }
 0x50e   : > { %v2154_v49 = vpack.c.bf16 %v1628_v47, %v1627_v48 }
 0x532   : > { %v1413_v41 = vpop.f32.mrb[18].mxu1 }
 0x533   : > { %v1417_v42 = vpack.c.bf16 %v1413_v41, %v1413_v41  ;;  %v2098_v43 = vpop.f32.mrb[19].mxu1 }
 0x535   : > { %2104 = vmatmul.mubr.msk.bf16.vlgmr.msra.gmra.mrb[20].mxu1 %vm700_vm1, %v1417_v42 }
 0x536   : > { %2152 = vmatpush3.bf16.xpose.msk.msra.mxu1 %vm2151_vm6, %v2150_v44  ;;  %2129 = vmatprep.mubr.msk.f32.mxu1 %vm2253_vm0, %v2252_v2 }
 0x537   : > { %2153 = vmatprep.subr.bf16.mxu1 %v2257_v29 }
 0x53e   : > { %2156 = vmatpush3.bf16.xpose.msk.msra.mxu1 %vm2151_vm6, %v2154_v49 }
 0x545   : > { %2130 = vmatmul.mubr.msk.f32.vlgmr.msra.gmra.mrb[24].mxu1 %vm700_vm1, %v2560_v7  ;;  %v1719_v7 = vpop.permute.xlu1 %1718 }
 0x608   : > { %v1478_v50 = vpop.f32.mrb[20].mxu1 }
 0x609   : > { %v2105_v51 = vpop.f32.mrb[21].mxu1  ;;  %v1479_v58 = vadd.f32 %v1929_v56, %v1478_v50 }
 0x60a   : > { %v1481_v52 = vpop.f32.mrb[22].mxu1 }
 0x60b   : > { %v2106_v53 = vpop.f32.mrb[23].mxu1 }
 0x618   : > { %v1710_v55 = vpop.f32.mrb[24].mxu1 }
 0x619   : > { %v2131_v2 = vpop.f32.mrb[25].mxu1  ;;  %2133 = vmatpush3.msk.msra.mxu0 %vm1344_vm5, %v1710_v55 }
 0x61a   : > { %2135 = vmatmul.mubr.msk.f32.vlgmr.msra.gmra.mrb[20].mxu0 %vm1340_vm2, %v1714_v54 }
 0x6ed   : > { %v1793_v57 = vpop.f32.mrb[20].mxu0 }
 0x6ee   : > { %v1794_v59 = vadd.f32 %v1793_v57, %v1719_v7  ;;  %v2136_v60 = vpop.f32.mrb[21].mxu0 }
 0x6f0   : > { %v1797_v61 = vadd.f32 %v1794_v59, %v1479_v58 }
 0x6f2   : > { %1799 = vst.msk [vmem:[%s485_s17] sm:$0xf] %vm1798_vm7, %v1797_v61 }
 0x6f3 PF: > { %s24_s29 = sadd.s32 1, %s2250_s29  }
 0x6f4   : > { %p21_p4 = scmp.ge.s32.totalorder %s24_s29, 4  }
 0x6f6   :  { %23 = sbr.rel (!%p21_p4) target bundleno = 1 (0x1), region = 109 }

// kernel: ddaqn_forward.9
= control target key start
LH: loop header
LB: loop body
LE: loop exit
PB: predicated region body
PF: predicated region fallthrough
CT: control target
= control target key end

     0   :  { %v1093_v2 = vmov 0   ;;  %s1380_s0 = inlined_call_operand.vmem [shape: f32[1,2,128], index: 0, kind: input, shape index: {}]   ;;  %s1381_s1 = inlined_call_operand.vmem [shape: bf16[128,512], index: 1, kind: input, shape index: {}]   ;;  %s1382_s2 = inlined_call_operand.vmem [shape: f32[1,512], index: 2, kind: input, shape index: {}]   ;;  %s1383_s3 = inlined_call_operand.vmem [shape: bf16[512,128], index: 3, kind: input, shape index: {}]   ;;  %s1384_s4 = inlined_call_operand.vmem [shape: f32[1,128], index: 4, kind: input, shape index: {}]   ;;  %s1385_s5 = inlined_call_operand.vmem [shape: bf16[128,6], index: 5, kind: input, shape index: {}]   ;;  %s1386_s6 = inlined_call_operand.vmem [shape: f32[1,6], index: 6, kind: input, shape index: {}]   ;;  %s1387_s7 = inlined_call_operand.hbm [shape: f32[1,2,6], index: 7, kind: output, shape index: {}]  }
   0x1   :  { %v977_v0 = vld [vmem:[%s1381_s1 + $0x4] ss:$16 sps:$4 sm:$0xff]   ;;  %v979_v1 = vld [vmem:[%s1381_s1 + $0xc] ss:$16 sps:$4 sm:$0xff]   ;;  %276 = vmatprep.mubr.bf16.mxu0 %v1093_v2  ;;  %317 = vmatprep.mubr.bf16.mxu1 %v1093_v2  ;;  %v981_v3 = vld [vmem:[%s1381_s1] ss:$16 sps:$4 sm:$0xff]  }
   0x2   :  { %244 = vmatprep.subr.bf16.mxu0 %v977_v0  ;;  %v982_v4 = vld [vmem:[%s1381_s1 + $0x8] ss:$16 sps:$4 sm:$0xff]   ;;  %285 = vmatprep.subr.bf16.mxu1 %v979_v1  ;;  %v983_v5 = vld [vmem:[%s1381_s1 + $0x24] ss:$16 sps:$4 sm:$0xff]   ;;  %v985_v6 = vld [vmem:[%s1381_s1 + $0x2c] ss:$16 sps:$4 sm:$0xff]  }
   0x3   :  { %245 = vmatpush1.bf16.msra.mxu0 %v981_v3  ;;  %286 = vmatpush1.bf16.msra.mxu1 %v982_v4  ;;  %v987_v7 = vld [vmem:[%s1381_s1 + $0x20] ss:$16 sps:$4 sm:$0xff]   ;;  %v988_v8 = vld [vmem:[%s1381_s1 + $0x28] ss:$16 sps:$4 sm:$0xff]   ;;  %v989_v9 = vld [vmem:[%s1381_s1 + $0x44] ss:$16 sps:$4 sm:$0xff]  }
   0x4   :  { %246 = vmatprep.subr.bf16.mxu0 %v983_v5  ;;  %287 = vmatprep.subr.bf16.mxu1 %v985_v6  ;;  %v991_v10 = vld [vmem:[%s1381_s1 + $0x4c] ss:$16 sps:$4 sm:$0xff]   ;;  %v993_v11 = vld [vmem:[%s1381_s1 + $0x40] ss:$16 sps:$4 sm:$0xff]   ;;  %v994_v12 = vld [vmem:[%s1381_s1 + $0x48] ss:$16 sps:$4 sm:$0xff]  }
   0x5   :  { %v995_v13 = vld [vmem:[%s1381_s1 + $0x64] ss:$16 sps:$4 sm:$0xff]   ;;  %v997_v14 = vld [vmem:[%s1381_s1 + $0x6c] ss:$16 sps:$4 sm:$0xff]   ;;  %v999_v15 = vld [vmem:[%s1381_s1 + $0x60] ss:$16 sps:$4 sm:$0xff]  }
   0x6   :  { %v1000_v16 = vld [vmem:[%s1381_s1 + $0x68] ss:$16 sps:$4 sm:$0xff]   ;;  %v1001_v17 = vld [vmem:[%s1381_s1 + $0x84] ss:$16 sps:$4 sm:$0xff]   ;;  %v1003_v18 = vld [vmem:[%s1381_s1 + $0x8c] ss:$16 sps:$4 sm:$0xff]  }
   0x7   :  { %247 = vmatpush1.bf16.msra.mxu0 %v987_v7  ;;  %288 = vmatpush1.bf16.msra.mxu1 %v988_v8  ;;  %v1005_v19 = vld [vmem:[%s1381_s1 + $0x80] ss:$16 sps:$4 sm:$0xff]   ;;  %v1006_v20 = vld [vmem:[%s1381_s1 + $0x88] ss:$16 sps:$4 sm:$0xff]   ;;  %v1007_v21 = vld [vmem:[%s1381_s1 + $0xa4] ss:$16 sps:$4 sm:$0xff]  }
   0x8   :  { %248 = vmatprep.subr.bf16.mxu0 %v989_v9  ;;  %289 = vmatprep.subr.bf16.mxu1 %v991_v10  ;;  %v1009_v22 = vld [vmem:[%s1381_s1 + $0xac] ss:$16 sps:$4 sm:$0xff]   ;;  %v1011_v23 = vld [vmem:[%s1381_s1 + $0xa0] ss:$16 sps:$4 sm:$0xff]   ;;  %v1012_v24 = vld [vmem:[%s1381_s1 + $0xa8] ss:$16 sps:$4 sm:$0xff]  }
   0x9   :  { %v1013_v25 = vld [vmem:[%s1381_s1 + $0xc4] ss:$16 sps:$4 sm:$0xff]   ;;  %v1015_v26 = vld [vmem:[%s1381_s1 + $0xcc] ss:$16 sps:$4 sm:$0xff]   ;;  %v1017_v27 = vld [vmem:[%s1381_s1 + $0xc0] ss:$16 sps:$4 sm:$0xff]  }
   0xa   :  { %v1018_v28 = vld [vmem:[%s1381_s1 + $0xc8] ss:$16 sps:$4 sm:$0xff]   ;;  %v1019_v29 = vld [vmem:[%s1381_s1 + $0xe4] ss:$16 sps:$4 sm:$0xff]   ;;  %v1021_v30 = vld [vmem:[%s1381_s1 + $0xec] ss:$16 sps:$4 sm:$0xff]  }
   0xb   :  { %249 = vmatpush1.bf16.msra.mxu0 %v993_v11  ;;  %290 = vmatpush1.bf16.msra.mxu1 %v994_v12  ;;  %v1023_v31 = vld [vmem:[%s1381_s1 + $0xe0] ss:$16 sps:$4 sm:$0xff]   ;;  %v1024_v32 = vld [vmem:[%s1381_s1 + $0xe8] ss:$16 sps:$4 sm:$0xff]  }
   0xc   :  { %250 = vmatprep.subr.bf16.mxu0 %v995_v13  ;;  %291 = vmatprep.subr.bf16.mxu1 %v997_v14  ;;  %v28_v33 = vld [vmem:[%s1380_s0] sm:$0x3]  ;;  %v1029_v39 = vld [vmem:[%s1383_s3 + $0x48] sm:$0xff]   ;;  %v1033_v43 = vld [vmem:[%s1383_s3 + $0x50] sm:$0xff]  }
   0xd   :  { %v1025_v34 = vld [vmem:[%s1383_s3 + $0x40] sm:$0xff]   ;;  %v29_v37 = vpack.c.bf16 %v28_v33, %v28_v33  ;;  %v1030_v40 = vld [vmem:[%s1383_s3 + $0xc8] sm:$0xff]   ;;  %v1034_v44 = vld [vmem:[%s1383_s3 + $0xd0] sm:$0xff]  }
   0xe   :  { %v1026_v35 = vld [vmem:[%s1383_s3 + $0xc0] sm:$0xff]   ;;  %v1031_v41 = vld [vmem:[%s1383_s3 + $0x8] sm:$0xff]   ;;  %v1035_v45 = vld [vmem:[%s1383_s3 + $0x10] sm:$0xff]  }
   0xf   :  { %251 = vmatpush1.bf16.msra.mxu0 %v999_v15  ;;  %292 = vmatpush1.bf16.msra.mxu1 %v1000_v16  ;;  %v1027_v36 = vld [vmem:[%s1383_s3] sm:$0xff]   ;;  %v1032_v42 = vld [vmem:[%s1383_s3 + $0x88] sm:$0xff]   ;;  %v1036_v46 = vld [vmem:[%s1383_s3 + $0x90] sm:$0xff]  }
  0x10   :  { %252 = vmatprep.subr.bf16.mxu0 %v1001_v17  ;;  %293 = vmatprep.subr.bf16.mxu1 %v1003_v18  ;;  %v1028_v38 = vld [vmem:[%s1383_s3 + $0x80] sm:$0xff]   ;;  %v1037_v47 = vld [vmem:[%s1383_s3 + $0x58] sm:$0xff]   ;;  %v1045_v55 = vld [vmem:[%s1383_s3 + $0x68] sm:$0xff]  }
  0x11   :  { %v1038_v48 = vld [vmem:[%s1383_s3 + $0xd8] sm:$0xff]   ;;  %v1041_v51 = vld [vmem:[%s1383_s3 + $0x60] sm:$0xff]   ;;  %v1046_v56 = vld [vmem:[%s1383_s3 + $0xe8] sm:$0xff]  }
  0x12   :  { %v1039_v49 = vld [vmem:[%s1383_s3 + $0x18] sm:$0xff]   ;;  %v1042_v52 = vld [vmem:[%s1383_s3 + $0xe0] sm:$0xff]   ;;  %v1047_v57 = vld [vmem:[%s1383_s3 + $0x28] sm:$0xff]  }
  0x13   :  { %253 = vmatpush1.bf16.msra.mxu0 %v1005_v19  ;;  %294 = vmatpush1.bf16.msra.mxu1 %v1006_v20  ;;  %v1040_v50 = vld [vmem:[%s1383_s3 + $0x98] sm:$0xff]   ;;  %v1043_v53 = vld [vmem:[%s1383_s3 + $0x20] sm:$0xff]   ;;  %v1048_v58 = vld [vmem:[%s1383_s3 + $0xa8] sm:$0xff]  }
  0x14   :  { %254 = vmatprep.subr.bf16.mxu0 %v1007_v21  ;;  %295 = vmatprep.subr.bf16.mxu1 %v1009_v22  ;;  %v1044_v54 = vld [vmem:[%s1383_s3 + $0xa0] sm:$0xff]  }
  0x17   :  { %255 = vmatpush1.bf16.msra.mxu0 %v1011_v23  ;;  %296 = vmatpush1.bf16.msra.mxu1 %v1012_v24 }
  0x18   :  { %256 = vmatprep.subr.bf16.mxu0 %v1013_v25  ;;  %297 = vmatprep.subr.bf16.mxu1 %v1015_v26 }
  0x1b   :  { %257 = vmatpush1.bf16.msra.mxu0 %v1017_v27  ;;  %298 = vmatpush1.bf16.msra.mxu1 %v1018_v28 }
  0x1c   :  { %258 = vmatprep.subr.bf16.mxu0 %v1019_v29  ;;  %299 = vmatprep.subr.bf16.mxu1 %v1021_v30 }
  0x1f   :  { %259 = vmatpush1.bf16.msra.mxu0 %v1023_v31  ;;  %300 = vmatpush1.bf16.msra.mxu1 %v1024_v32 }
  0x20   :  { %900 = vmatprep.subr.bf16.mxu0 %v1025_v34  ;;  %922 = vmatprep.subr.bf16.mxu1 %v1026_v35 }
  0x22   :  { %277 = vmatmul.mubr.bf16.vlgmr.msra.gmra.mrb[0].mxu0 %v29_v37  ;;  %318 = vmatmul.mubr.bf16.vlgmr.msra.gmra.mrb[0].mxu1 %v29_v37 }
  0x23   :  { %901 = vmatpush3.bf16.msra.mxu0 %v1027_v36  ;;  %923 = vmatpush3.bf16.msra.mxu1 %v1028_v38 }
  0x24   :  { %902 = vmatprep.subr.bf16.mxu0 %v1029_v39  ;;  %924 = vmatprep.subr.bf16.mxu1 %v1030_v40 }
  0x27   :  { %903 = vmatpush3.bf16.msra.mxu0 %v1031_v41  ;;  %925 = vmatpush3.bf16.msra.mxu1 %v1032_v42 }
  0x28   :  { %904 = vmatprep.subr.bf16.mxu0 %v1033_v43  ;;  %926 = vmatprep.subr.bf16.mxu1 %v1034_v44 }
  0x2b   :  { %905 = vmatpush3.bf16.msra.mxu0 %v1035_v45  ;;  %927 = vmatpush3.bf16.msra.mxu1 %v1036_v46 }
  0x2c   :  { %906 = vmatprep.subr.bf16.mxu0 %v1037_v47  ;;  %928 = vmatprep.subr.bf16.mxu1 %v1038_v48 }
  0x2f   :  { %907 = vmatpush3.bf16.msra.mxu0 %v1039_v49  ;;  %929 = vmatpush3.bf16.msra.mxu1 %v1040_v50 }
  0x30   :  { %908 = vmatprep.subr.bf16.mxu0 %v1041_v51  ;;  %930 = vmatprep.subr.bf16.mxu1 %v1042_v52 }
  0x33   :  { %909 = vmatpush3.bf16.msra.mxu0 %v1043_v53  ;;  %931 = vmatpush3.bf16.msra.mxu1 %v1044_v54 }
  0x34   :  { %910 = vmatprep.subr.bf16.mxu0 %v1045_v55  ;;  %932 = vmatprep.subr.bf16.mxu1 %v1046_v56 }
  0x37   :  { %911 = vmatpush3.bf16.msra.mxu0 %v1047_v57  ;;  %933 = vmatpush3.bf16.msra.mxu1 %v1048_v58 }
  0x38   :  { %12 = vsyncpa [#allocation3], 0  ;;  %v1049_v59 = vld [vmem:[%s1383_s3 + $0x70] sm:$0xff]   ;;  %v1053_v63 = vld [vmem:[%s1383_s3 + $0x78] sm:$0xff]   ;;  %v1094_v3 = vmov 0.0   ;;  %v64_v4 = vlaneseq  ;;  %vm1095_vm0 = vmmov 0  }
  0x39   :  { %v1050_v60 = vld [vmem:[%s1383_s3 + $0xf0] sm:$0xff]   ;;  %912 = vmatprep.subr.bf16.mxu0 %v1049_v59  ;;  %v1054_v0 = vld [vmem:[%s1383_s3 + $0xf8] sm:$0xff]   ;;  %v62_v8 = vld [vmem:[%s1382_s2] sm:$0xf]  ;;  %vm790_vm1 = vcmask 41984  }
  0x3a   :  { %v1051_v61 = vld [vmem:[%s1383_s3 + $0x30] sm:$0xff]   ;;  %934 = vmatprep.subr.bf16.mxu1 %v1050_v60  ;;  %v1055_v1 = vld [vmem:[%s1383_s3 + $0x38] sm:$0xff]   ;;  %v65_v5 = vshrl.u32 %v64_v4, 7  ;;  %v1057_v34 = vld [vmem:[%s1385_s5] sm:$0xff]  }
  0x3b   :  { %v1052_v62 = vld [vmem:[%s1383_s3 + $0xb0] sm:$0xff]   ;;  %913 = vmatpush3.bf16.msra.mxu0 %v1051_v61  ;;  %v1056_v2 = vld [vmem:[%s1383_s3 + $0xb8] sm:$0xff]   ;;  %v1058_v36 = vld [vmem:[%s1385_s5 + $0x8] sm:$0xff]  }
  0x3c   :  { %935 = vmatpush3.bf16.msra.mxu1 %v1052_v62  ;;  %914 = vmatprep.subr.bf16.mxu0 %v1053_v63  ;;  %v66_v6 = vsub.s32 0, %v65_v5  ;;  %v74_v7 = vsub.s32 2, %v65_v5  ;;  %v70_v9 = vsub.s32 1, %v65_v5  ;;  %v78_v10 = vsub.s32 3, %v65_v5  ;;  %v1059_v37 = vld [vmem:[%s1385_s5 + $0x10] sm:$0xff]   ;;  %v1060_v38 = vld [vmem:[%s1385_s5 + $0x18] sm:$0xff]  }
  0x3d   :  { %936 = vmatprep.subr.bf16.mxu1 %v1054_v0  ;;  %v1061_v39 = vld [vmem:[%s1385_s5 + $0x20] sm:$0xff]   ;;  %v1062_v40 = vld [vmem:[%s1385_s5 + $0x28] sm:$0xff]   ;;  %v1063_v41 = vld [vmem:[%s1385_s5 + $0x30] sm:$0xff]  }
  0x3e   :  { %v67_v11 = vrot.slane %v62_v8, %v66_v6  ;;  %v75_v12 = vrot.slane %v62_v8, %v74_v7  ;;  %v71_v13 = vrot.slane %v62_v8, %v70_v9  ;;  %v79_v14 = vrot.slane %v62_v8, %v78_v10  ;;  %v1064_v42 = vld [vmem:[%s1385_s5 + $0x38] sm:$0xff]   ;;  %v858_v45 = vld [vmem:[%s1384_s4] ss:$0 sm:$0xff]  ;;  %s1096_s4 = smov [#allocation2]  }
  0x3f   :  { %915 = vmatpush3.bf16.msra.mxu0 %v1055_v1  ;;  %v891_v58 = vld [vmem:[%s1386_s6] ss:$0 sm:$0xff]  ;;  %s818_s6 = sshll.u32 %s1096_s4, 4  ;;  %s819_s6 = int_to_ptr.vmem [resolvable:$true] %s818_s6 }
  0x40   :  { %937 = vmatpush3.bf16.msra.mxu1 %v1056_v2  ;;  %953 = vmatprep.subr.bf16.mxu0 %v1094_v3  ;;  %s1069_s0 = scalar_lea.vmem %s819_s6, 32  ;;  %p1074_p1 = scmp.lt.s32.totalorder %s819_s6, %s819_s6 }
  0x41   :  { %p1070_p0 = scmp.ne.s32.totalorder %s819_s6, %s1069_s0  ;;  %p1075_p2 = scmp.lt.s32.totalorder %s1069_s0, %s1069_s0 }
  0x43   :  { %p1076_p3 = por %p1075_p2, %p1074_p1 }
  0x45   :  { %p1077_p4 = pnand %p1076_p3, %p1070_p0 }
  0xf5   :  { %v278_v15 = vpop.f32.mrb[0].mxu0  ;;  %v319_v16 = vpop.f32.mrb[0].mxu1 }
  0xf6   :  { %v279_v17 = vadd.f32 %v278_v15, %v67_v11  ;;  %v320_v18 = vadd.f32 %v319_v16, %v75_v12  ;;  %v280_v19 = vpop.f32.mrb[1].mxu0  ;;  %v321_v20 = vpop.f32.mrb[1].mxu1 }
  0xf7   :  { %v281_v21 = vadd.f32 %v280_v19, %v71_v13  ;;  %v322_v22 = vadd.f32 %v321_v20, %v79_v14  ;;  %v282_v23 = vpop.f32.mrb[2].mxu0  ;;  %v323_v24 = vpop.f32.mrb[2].mxu1 }
  0xf8   :  { %v326_v25 = vmax.f32 %v279_v17, 0.0  ;;  %v328_v26 = vmax.f32 %v320_v18, 0.0  ;;  %v283_v27 = vpop.f32.mrb[3].mxu0  ;;  %v324_v28 = vpop.f32.mrb[3].mxu1 }
  0xf9   :  { %v327_v29 = vmax.f32 %v281_v21, 0.0  ;;  %v329_v30 = vmax.f32 %v322_v22, 0.0 }
  0xfa   :  { %v332_v31 = vpack.c.bf16 %v328_v26, %v328_v26  ;;  %v330_v35 = vpack.c.bf16 %v326_v25, %v326_v25 }
  0xfb   :  { %v331_v32 = vpack.c.bf16 %v327_v29, %v327_v29  ;;  %v333_v33 = vpack.c.bf16 %v329_v30, %v329_v30 }
  0xfd   :  { %629 = vmatprep.mubr.bf16.mxu0 %v331_v32  ;;  %669 = vmatprep.mubr.bf16.mxu1 %v333_v33 }
  0xfe   :  { %630 = vmatmul.mubr.bf16.vlgmr.msra.gmra.mrb[4].mxu0 %v330_v35  ;;  %670 = vmatmul.mubr.bf16.vlgmr.msra.gmra.mrb[4].mxu1 %v332_v31 }
  0xff   :  { %954 = vmatpush3.bf16.msra.mxu0 %v1057_v34  ;;  %969 = vmatprep.mubr.msk.bf16.mxu0 %vm1095_vm0, %v1094_v3 }
 0x100   :  { %955 = vmatprep.subr.bf16.mxu0 %v1094_v3 }
 0x103   :  { %956 = vmatpush3.bf16.msra.mxu0 %v1058_v36 }
 0x104   :  { %957 = vmatprep.subr.bf16.mxu0 %v1094_v3 }
 0x107   :  { %958 = vmatpush3.bf16.msra.mxu0 %v1059_v37 }
 0x108   :  { %959 = vmatprep.subr.bf16.mxu0 %v1094_v3 }
 0x10b   :  { %960 = vmatpush3.bf16.msra.mxu0 %v1060_v38 }
 0x10c   :  { %961 = vmatprep.subr.bf16.mxu0 %v1094_v3 }
 0x10f   :  { %962 = vmatpush3.bf16.msra.mxu0 %v1061_v39 }
 0x110   :  { %963 = vmatprep.subr.bf16.mxu0 %v1094_v3 }
 0x113   :  { %964 = vmatpush3.bf16.msra.mxu0 %v1062_v40 }
 0x114   :  { %965 = vmatprep.subr.bf16.mxu0 %v1094_v3 }
 0x117   :  { %966 = vmatpush3.bf16.msra.mxu0 %v1063_v41 }
 0x118   :  { %967 = vmatprep.subr.bf16.mxu0 %v1094_v3 }
 0x11b   :  { %968 = vmatpush3.bf16.msra.mxu0 %v1064_v42 }
 0x1d1   :  { %v916_v43 = vpop.f32.mrb[4].mxu0  ;;  %v938_v44 = vpop.f32.mrb[4].mxu1 }
 0x1d2   :  { %v917_v46 = vpop.f32.mrb[5].mxu0  ;;  %v939_v47 = vpop.f32.mrb[5].mxu1 }
 0x1d3   :  { %v918_v48 = vadd.f32 %v917_v46, %v916_v43  ;;  %v940_v49 = vadd.f32 %v939_v47, %v938_v44  ;;  %v919_v50 = vpop.f32.mrb[6].mxu0  ;;  %v941_v51 = vpop.f32.mrb[6].mxu1 }
 0x1d4   :  { %v920_v52 = vpop.f32.mrb[7].mxu0  ;;  %v942_v53 = vpop.f32.mrb[7].mxu1 }
 0x1d5   :  { %v632_v54 = vadd.f32 %v918_v48, %v858_v45 }
 0x1d7   :  { %v672_v55 = vadd.f32 %v940_v49, %v632_v54 }
 0x1d9   :  { %v677_v56 = vmax.f32 %v672_v55, 0.0 }
 0x1db   :  { %v678_v57 = vpack.c.bf16 %v677_v56, %v677_v56 }
 0x1dd   :  { %970 = vmatmul.mubr.bf16.vlgmr.msra.gmra.mrb[8].mxu0 %v678_v57 }
 0x2b0   :  { %v784_v59 = vpop.f32.mrb[8].mxu0 }
 0x2b1   :  { %v785_v60 = vadd.f32 %v891_v58, %v784_v59  ;;  %v971_v61 = vpop.f32.mrb[9].mxu0 }
 0x2b2   :  { %v787_v62 = vpop.f32.mrb[10].mxu0 }
 0x2b3   :  { %v791_v63 = vsel %vm790_vm1, %v785_v60, -inf  ;;  %v972_v0 = vpop.f32.mrb[11].mxu0 }
 0x2b4   :  { %v792_v1 = vrot.slane %v791_v63, 4 }
 0x2b6   :  { %v793_v2 = vmax.f32 %v791_v63, %v792_v1 }
 0x2b8   :  { %v794_v3 = vrot.slane %v793_v2, 2 }
 0x2ba   :  { %v795_v4 = vmax.f32 %v793_v2, %v794_v3 }
 0x2bc   :  { %v796_v5 = vrot.slane %v795_v4, 1 }
 0x2be   :  { %v797_v6 = vmax.f32 %v795_v4, %v796_v5 }
 0x2c0   :  { %v798_v7 = vsub.f32 %v785_v60, %v797_v6 }
 0x2c2   :  { %v799_v8 = vmul.f32 1.442695, %v798_v7 }
 0x2c4   :  { %1065 = vpow2.f32 %v799_v8 }
 0x2ce   :  { %v1066_v9 = vpop.eup %1065 }
 0x2cf   :  { %v801_v10 = vsel %vm790_vm1, %v1066_v9, 0.0 }
 0x2d0   :  { %v802_v11 = vrot.slane %v801_v10, 4 }
 0x2d2   :  { %v803_v12 = vadd.f32 %v802_v11, %v801_v10 }
 0x2d4   :  { %v804_v13 = vrot.slane %v803_v12, 2 }
 0x2d6   :  { %v805_v14 = vadd.f32 %v804_v13, %v803_v12 }
 0x2d8   :  { %v806_v15 = vrot.slane %v805_v14, 1 }
 0x2da   :  { %v807_v16 = vadd.f32 %v806_v15, %v805_v14 }
 0x2dc   :  { %1067 = vlog2.f32 %v807_v16 }
 0x2e6   :  { %v1068_v17 = vpop.eup %1067 }
 0x2e7   :  { %v809_v18 = vmul.f32 0.6931472, %v1068_v17 }
 0x2e9   :  { %v810_v19 = vsub.f32 %v798_v7, %v809_v18 }
 0x2eb   :  { %811 = vst.msk [vmem:[#allocation2] sm:$0x3] %vm790_vm1, %v810_v19 }
 0x2ec   :  { %1080 = shalt.err (!%p1077_p4)
}
 0x2ed   :  { %s1081_s30 = scalar_lea.hbm %s1387_s7, 32 }
 0x2ee   :  { %p1082_p5 = scmp.ne.s32.totalorder %s1387_s7, %s1081_s30  ;;  %p1085_p6 = scmp.lt.u32.totalorder %s1081_s30, %s1387_s7 }
 0x2f0   :  { %p1087_p7 = pnand %p1085_p6, %p1082_p5 }
 0x2f2   :  { %1090 = shalt.err (!%p1087_p7)
}
 0x2f3   :  { %821 = dma.vmem_to_hbm [thread:$0]  %s819_s6, 32, %s1387_s7, [#allocation3]  }
 0x2f4   :  { %1091 = dma.done.wait [#allocation3], 32  }
 0x2f5   :  { %1092 = vsyncadd [#allocation3], 4294967264 }
 0x2f6   :  { %825 = vsyncpa [#allocation3], 1 }

</bundles_post_ra>
